<compile_context>
chip_gen: v7x
topology: tpu7x:2x2x1
jax: 0.10.0
libtpu: 0.0.40
codegen_flags: <defaults>
</compile_context>

<pallas_src>
import jax
import jax.numpy as jnp
from jax.experimental import pallas as pl
from jax.experimental.pallas import tpu as pltpu


def _sigmoid(v):
    # EUP-friendly sigmoid: one tanh (EUP) + mul/add; avoids the VPU divide.
    return 0.5 * jnp.tanh(0.5 * v) + 0.5


def _make_kernel(H, W, D, C, Dp, Ktap, Ktot):
    HW = H * W

    def kernel(g_ref, h_ref, c_ref, wg_ref, wc_ref,
               go_ref, ho_ref, co_ref, sc_ref):
        # g_ref  : (1, C, HW)   raw grad (1/gradnorm folded into the weights)
        # h_ref  : (1, D, HW)   previous hidden
        # c_ref  : (1, D, HW)   previous cell
        # wg_ref : (4*Dp, Ktot) gate conv weights, im2col layout, bias in col 9*Ktap
        # wc_ref : (C, D)       1x1 conv weights
        # sc_ref : (Ktot, HW)   im2col VMEM scratch
        xg = g_ref[0]                                   # (C, HW)
        xh = h_ref[0]                                    # (D, HW)

        # Static per-tap validity masks over the flattened spatial positions.
        pos = jax.lax.broadcasted_iota(jnp.int32, (1, HW), 1)
        col = jax.lax.rem(pos, W)
        row_ok = {-1: pos >= W, 0: None, 1: pos < (H - 1) * W}
        col_ok = {-1: col >= 1, 0: None, 1: col < (W - 1)}

        # Bias rows of the im2col scratch: row 9*Ktap = 1.0, the rest 0.0.
        sub = jax.lax.broadcasted_iota(jnp.int32, (Ktot - 9 * Ktap, HW), 0)
        sc_ref[9 * Ktap:Ktot, :] = (sub == 0).astype(jnp.float32)

        # im2col: 9 lane-rolled + masked taps written into the VMEM scratch.
        for t in range(9):
            dy, dx = t // 3 - 1, t % 3 - 1
            shift = (-(dy * W + dx)) % HW               # result[p] = x[p + dy*W + dx]
            mask = None
            for m in (row_ok[dy], col_ok[dx]):
                if m is not None:
                    mask = m if mask is None else jnp.logical_and(mask, m)

            def tap(x, shift=shift, mask=mask):
                if shift != 0:
                    x = pltpu.roll(x, shift=shift, axis=1)
                if mask is not None:
                    x = jnp.where(mask, x, 0.0)
                return x

            base = t * Ktap
            sc_ref[base:base + D, :] = tap(xh)          # 24t % 8 == 0: aligned
            sc_ref[base + D:base + Ktap, :] = tap(xg)   # small 4-row masked store

        # Single MXU matmul; bias folded in via the ones row.
        acc = jnp.dot(wg_ref[...], sc_ref[...],
                      preferred_element_type=jnp.float32)     # (4*Dp, HW)

        # Gate chunks start at multiples of Dp=24 -> 8-sublane aligned slices.
        in_gate       = _sigmoid(acc[0 * Dp:0 * Dp + D])
        remember_gate = _sigmoid(acc[1 * Dp:1 * Dp + D])
        out_gate      = _sigmoid(acc[2 * Dp:2 * Dp + D])
        cell_gate     = jnp.tanh(acc[3 * Dp:3 * Dp + D])

        cell_new = remember_gate * c_ref[0] + in_gate * cell_gate   # (D, HW)
        hidden_new = out_gate * jnp.tanh(cell_new)                  # (D, HW)

        ho_ref[0] = hidden_new
        co_ref[0] = cell_new
        go_ref[0] = jnp.dot(wc_ref[...], hidden_new,                # (C, HW)
                            preferred_element_type=jnp.float32)

    return kernel


def prepare_params(params, gradnorm=1.0):
    """One-time weight preprocessing (hoisted out of the per-step forward).

    params = (wg (4D, C+D, 3, 3), bg (4D,), wc (C, D, 1, 1)).
    Returns (wg_flat (4*Dp, Ktot) f32, wc2 (C, D) f32).
    """
    wg, bg, wc = params
    G4, Cin, kh, kw = wg.shape
    assert (kh, kw) == (3, 3)
    C, D = wc.shape[0], wc.shape[1]
    assert Cin == C + D and G4 == 4 * D
    Dp = ((D + 7) // 8) * 8            # gate chunk padded to an 8-sublane boundary
    Ktap = D + C                       # per-tap K block: [hidden | grad]
    Ktot = 9 * Ktap + 8                # + bias-ones row + 7 zero rows

    w = jnp.transpose(wg.astype(jnp.float32), (0, 2, 3, 1)).reshape(G4, 9, Cin)
    wk = jnp.zeros((G4, 9, Ktap), jnp.float32)
    wk = wk.at[:, :, 0:D].set(w[:, :, C:])                 # hidden-channel columns
    wk = wk.at[:, :, D:Ktap].set(w[:, :, :C] / gradnorm)   # grad columns (scaled)
    wk = wk.reshape(G4, 9 * Ktap)
    extra = jnp.zeros((G4, Ktot - 9 * Ktap), jnp.float32)
    extra = extra.at[:, 0].set(bg.astype(jnp.float32))     # bias column
    wk = jnp.concatenate([wk, extra], axis=1)              # (4D, Ktot)
    # pad each gate chunk from D to Dp output rows (pad rows are all-zero)
    wk = jnp.pad(wk.reshape(4, D, Ktot), ((0, 0), (0, Dp - D), (0, 0)))
    wg_flat = wk.reshape(4 * Dp, Ktot)

    wc2 = wc.astype(jnp.float32)[:, :, 0, 0]               # (C, D)
    return wg_flat, wc2


@jax.jit
def _forward(hidden, cell, grad, wg_flat, wc2):
    B, C, H, W = grad.shape
    D = wc2.shape[1]
    HW = H * W
    Dp = wg_flat.shape[0] // 4
    Ktot = wg_flat.shape[1]
    Ktap = C + D
    # Lane-dense layout assumption (perf): flattened spatial dim on lanes.
    assert HW % 128 == 0, "H*W must be a multiple of 128 for this kernel"

    g = grad.astype(jnp.float32).reshape(B, C, HW)
    h = hidden.astype(jnp.float32).reshape(B, D, HW)
    c = cell.astype(jnp.float32).reshape(B, D, HW)

    kernel = _make_kernel(H, W, D, C, Dp, Ktap, Ktot)
    g_out, h_out, c_out = pl.pallas_call(
        kernel,
        out_shape=(
            jax.ShapeDtypeStruct((B, C, HW), jnp.float32),
            jax.ShapeDtypeStruct((B, D, HW), jnp.float32),
            jax.ShapeDtypeStruct((B, D, HW), jnp.float32),
        ),
        grid=(B,),
        in_specs=[
            pl.BlockSpec((1, C, HW), lambda b: (b, 0, 0)),
            pl.BlockSpec((1, D, HW), lambda b: (b, 0, 0)),
            pl.BlockSpec((1, D, HW), lambda b: (b, 0, 0)),
            pl.BlockSpec((4 * Dp, Ktot), lambda b: (0, 0)),   # resident weights
            pl.BlockSpec((C, D), lambda b: (0, 0)),           # resident weights
        ],
        out_specs=[
            pl.BlockSpec((1, C, HW), lambda b: (b, 0, 0)),
            pl.BlockSpec((1, D, HW), lambda b: (b, 0, 0)),
            pl.BlockSpec((1, D, HW), lambda b: (b, 0, 0)),
        ],
        scratch_shapes=[pltpu.VMEM((Ktot, HW), jnp.float32)],
        compiler_params=pltpu.CompilerParams(
            dimension_semantics=("parallel",)),
    )(g, h, c, wg_flat, wc2)

    return (g_out.reshape(B, C, H, W),
            h_out.reshape(B, D, H, W),
            c_out.reshape(B, D, H, W))


def grad_update_lstm_forward(hidden, cell, grad, prepared):
    """Forward pass of model_GradUpdateLSTM (2-D case, PeriodicBnd=False)."""
    wg_flat, wc2 = prepared
    if hidden is None:
        B, C, H, W = grad.shape
        D = wc2.shape[1]
        hidden = jnp.zeros((B, D, H, W), jnp.float32)
        cell = jnp.zeros((B, D, H, W), jnp.float32)
    return _forward(hidden, cell, grad, wg_flat, wc2)


def _reference(hidden, cell, grad, params, gradnorm=1.0):
    """Pure-JAX reference mirroring the PyTorch module."""
    wg, bg, wc = params
    D = wc.shape[1]
    g = grad / gradnorm
    x = jnp.concatenate([g, hidden], axis=1)
    gates = jax.lax.conv_general_dilated(
        x, wg, window_strides=(1, 1), padding=((1, 1), (1, 1)),
        dimension_numbers=("NCHW", "OIHW", "NCHW"),
        precision=jax.lax.Precision.HIGHEST)
    gates = gates + bg[None, :, None, None]
    in_gate = jax.nn.sigmoid(gates[:, 0:D])
    remember_gate = jax.nn.sigmoid(gates[:, D:2 * D])
    out_gate = jax.nn.sigmoid(gates[:, 2 * D:3 * D])
    cell_gate = jnp.tanh(gates[:, 3 * D:4 * D])
    cell_new = remember_gate * cell + in_gate * cell_gate
    hidden_new = out_gate * jnp.tanh(cell_new)
    grad_out = jax.lax.conv_general_dilated(
        hidden_new, wc, window_strides=(1, 1), padding="VALID",
        dimension_numbers=("NCHW", "OIHW", "NCHW"),
        precision=jax.lax.Precision.HIGHEST)
    return grad_out, hidden_new, cell_new


if __name__ == "__main__":
    # ShapeData = (C, H, W) = (4, 16, 16)  ->  dim_state D = 5*C = 20
    B, C, H, W = 2, 4, 16, 16
    D = 5 * C
    Cin = C + D

    key = jax.random.PRNGKey(0)
    ks = jax.random.split(key, 6)
    wg = jax.random.normal(ks[0], (4 * D, Cin, 3, 3), jnp.float32) * (Cin * 9) ** -0.5
    bg = jax.random.normal(ks[1], (4 * D,), jnp.float32) * 0.1
    wc = jax.random.normal(ks[2], (C, D, 1, 1), jnp.float32) * D ** -0.5
    grad = jax.random.normal(ks[3], (B, C, H, W), jnp.float32)
    hidden0 = jax.random.normal(ks[4], (B, D, H, W), jnp.float32) * 0.5
    cell0 = jax.random.normal(ks[5], (B, D, H, W), jnp.float32) * 0.5
    params = (wg, bg, wc)
    gradnorm = 2.0

    # One-time weight preprocessing (hoisted out of the per-step path).
    prepared = jax.block_until_ready(prepare_params(params, gradnorm))

    # with provided previous state
    g1, h1, c1 = grad_update_lstm_forward(hidden0, cell0, grad, prepared)
    jax.block_until_ready((g1, h1, c1))
    g1r, h1r, c1r = _reference(hidden0, cell0, grad, params, gradnorm)

    # with prev_state = None (zeros), as in the PyTorch module
    g0, h0, c0 = grad_update_lstm_forward(None, None, grad, prepared)
    jax.block_until_ready((g0, h0, c0))
    g0r, h0r, c0r = _reference(jnp.zeros_like(hidden0), jnp.zeros_like(cell0),
                               grad, params, gradnorm)

    for got, ref in [(g1, g1r), (h1, h1r), (c1, c1r),
                     (g0, g0r), (h0, h0r), (c0, c0r)]:
        err = float(jnp.max(jnp.abs(got - ref)))
        assert bool(jnp.allclose(got, ref, rtol=1e-3, atol=1e-3)), err

    print("KERNEL_OK")
</pallas_src>

<mosaic_0001>
module attributes {stable_mosaic.version = 11 : i64} {
  func.func @kernel(%arg0: i32, %arg1: memref<1x4x256xf32, #tpu.memory_space<vmem>>, %arg2: memref<1x20x256xf32, #tpu.memory_space<vmem>>, %arg3: memref<1x20x256xf32, #tpu.memory_space<vmem>>, %arg4: memref<96x224xf32, #tpu.memory_space<vmem>>, %arg5: memref<4x20xf32, #tpu.memory_space<vmem>>, %arg6: memref<1x4x256xf32, #tpu.memory_space<vmem>>, %arg7: memref<1x20x256xf32, #tpu.memory_space<vmem>>, %arg8: memref<1x20x256xf32, #tpu.memory_space<vmem>>, %arg9: memref<224x256xf32, #tpu.memory_space<vmem>>) attributes {dimension_semantics = [#tpu.dimension_semantics<parallel>], iteration_bounds = array<i64: 2>, scalar_prefetch = 0 : i64, scratch_operands = 1 : i64, tpu.core_type = #tpu.core_type<tc>, window_params = [{transform_indices = @transform_0, window_bounds = array<i64: 1, 4, 256>}, {transform_indices = @transform_1, window_bounds = array<i64: 1, 20, 256>}, {transform_indices = @transform_2, window_bounds = array<i64: 1, 20, 256>}, {pipeline_mode = #tpu.pipeline_mode<synchronous>, transform_indices = @transform_3, window_bounds = array<i64: 96, 224>}, {pipeline_mode = #tpu.pipeline_mode<synchronous>, transform_indices = @transform_4, window_bounds = array<i64: 4, 20>}, {transform_indices = @transform_5, window_bounds = array<i64: 1, 4, 256>}, {transform_indices = @transform_6, window_bounds = array<i64: 1, 20, 256>}, {transform_indices = @transform_7, window_bounds = array<i64: 1, 20, 256>}]} {
    %c0 = arith.constant 0 : index
    %c0_0 = arith.constant 0 : index
    %c0_1 = arith.constant 0 : index
    %0 = vector.load %arg1[%c0, %c0_0, %c0_1] : memref<1x4x256xf32, #tpu.memory_space<vmem>>, vector<1x4x256xf32>
    %1 = vector.shape_cast %0 : vector<1x4x256xf32> to vector<4x256xf32>
    %c0_2 = arith.constant 0 : index
    %c0_3 = arith.constant 0 : index
    %c0_4 = arith.constant 0 : index
    %2 = vector.load %arg2[%c0_2, %c0_3, %c0_4] : memref<1x20x256xf32, #tpu.memory_space<vmem>>, vector<1x20x256xf32>
    %3 = vector.shape_cast %2 : vector<1x20x256xf32> to vector<20x256xf32>
    %4 = tpu.iota {dimensions = array<i32: 1>} : vector<1x256xi32>
    %c16_i32 = arith.constant 16 : i32
    %5 = vector.broadcast %c16_i32 : i32 to vector<1x256xi32>
    %6 = arith.remsi %4, %5 : vector<1x256xi32>
    %c16_i32_5 = arith.constant 16 : i32
    %7 = vector.broadcast %c16_i32_5 : i32 to vector<1x256xi32>
    %8 = arith.cmpi sge, %4, %7 : vector<1x256xi32>
    %c240_i32 = arith.constant 240 : i32
    %9 = vector.broadcast %c240_i32 : i32 to vector<1x256xi32>
    %10 = arith.cmpi slt, %4, %9 : vector<1x256xi32>
    %c1_i32 = arith.constant 1 : i32
    %11 = vector.broadcast %c1_i32 : i32 to vector<1x256xi32>
    %12 = arith.cmpi sge, %6, %11 : vector<1x256xi32>
    %c15_i32 = arith.constant 15 : i32
    %13 = vector.broadcast %c15_i32 : i32 to vector<1x256xi32>
    %14 = arith.cmpi slt, %6, %13 : vector<1x256xi32>
    %15 = tpu.iota {dimensions = array<i32: 0>} : vector<8x256xi32>
    %c0_i32 = arith.constant 0 : i32
    %16 = vector.broadcast %c0_i32 : i32 to vector<8x256xi32>
    %17 = arith.cmpi eq, %15, %16 : vector<8x256xi32>
    %18 = arith.extui %17 : vector<8x256xi1> to vector<8x256xi32>
    %19 = arith.sitofp %18 : vector<8x256xi32> to vector<8x256xf32>
    %c216 = arith.constant 216 : index
    %c0_6 = arith.constant 0 : index
    %20 = vector.load %arg9[%c216, %c0_6] : memref<224x256xf32, #tpu.memory_space<vmem>>, vector<8x256xf32>
    tpu.vector_store %arg9[%c216, %c0_6], %19 {strides = array<i32>} : memref<224x256xf32, #tpu.memory_space<vmem>>, vector<8x256xf32>,
    %21 = arith.andi %8, %12 : vector<1x256xi1>
    %c17_i32 = arith.constant 17 : i32
    %22 = tpu.dynamic_rotate %3 by %c17_i32 dim 1 : vector<20x256xf32>, i32 -> vector<20x256xf32>
    %cst = arith.constant 0.000000e+00 : f32
    %23 = vector.shape_cast %21 : vector<1x256xi1> to vector<1x256xi1>
    %24 = vector.broadcast %23 : vector<1x256xi1> to vector<20x256xi1>
    %25 = vector.broadcast %cst : f32 to vector<20x256xf32>
    %26 = arith.select %24, %22, %25 : vector<20x256xi1>, vector<20x256xf32>
    %c0_7 = arith.constant 0 : index
    %c0_8 = arith.constant 0 : index
    %27 = vector.load %arg9[%c0_7, %c0_8] : memref<224x256xf32, #tpu.memory_space<vmem>>, vector<20x256xf32>
    tpu.vector_store %arg9[%c0_7, %c0_8], %26 {strides = array<i32>} : memref<224x256xf32, #tpu.memory_space<vmem>>, vector<20x256xf32>,
    %c17_i32_9 = arith.constant 17 : i32
    %28 = tpu.dynamic_rotate %1 by %c17_i32_9 dim 1 : vector<4x256xf32>, i32 -> vector<4x256xf32>
    %cst_10 = arith.constant 0.000000e+00 : f32
    %29 = vector.shape_cast %21 : vector<1x256xi1> to vector<1x256xi1>
    %30 = vector.broadcast %29 : vector<1x256xi1> to vector<4x256xi1>
    %31 = vector.broadcast %cst_10 : f32 to vector<4x256xf32>
    %32 = arith.select %30, %28, %31 : vector<4x256xi1>, vector<4x256xf32>
    %c20 = arith.constant 20 : index
    %c0_11 = arith.constant 0 : index
    %33 = vector.load %arg9[%c20, %c0_11] : memref<224x256xf32, #tpu.memory_space<vmem>>, vector<4x256xf32>
    tpu.vector_store %arg9[%c20, %c0_11], %32 {strides = array<i32>} : memref<224x256xf32, #tpu.memory_space<vmem>>, vector<4x256xf32>,
    %c16_i32_12 = arith.constant 16 : i32
    %34 = tpu.dynamic_rotate %3 by %c16_i32_12 dim 1 : vector<20x256xf32>, i32 -> vector<20x256xf32>
    %cst_13 = arith.constant 0.000000e+00 : f32
    %35 = vector.shape_cast %8 : vector<1x256xi1> to vector<1x256xi1>
    %36 = vector.broadcast %35 : vector<1x256xi1> to vector<20x256xi1>
    %37 = vector.broadcast %cst_13 : f32 to vector<20x256xf32>
    %38 = arith.select %36, %34, %37 : vector<20x256xi1>, vector<20x256xf32>
    %c24 = arith.constant 24 : index
    %c0_14 = arith.constant 0 : index
    %39 = vector.load %arg9[%c24, %c0_14] : memref<224x256xf32, #tpu.memory_space<vmem>>, vector<20x256xf32>
    tpu.vector_store %arg9[%c24, %c0_14], %38 {strides = array<i32>} : memref<224x256xf32, #tpu.memory_space<vmem>>, vector<20x256xf32>,
    %c16_i32_15 = arith.constant 16 : i32
    %40 = tpu.dynamic_rotate %1 by %c16_i32_15 dim 1 : vector<4x256xf32>, i32 -> vector<4x256xf32>
    %cst_16 = arith.constant 0.000000e+00 : f32
    %41 = vector.shape_cast %8 : vector<1x256xi1> to vector<1x256xi1>
    %42 = vector.broadcast %41 : vector<1x256xi1> to vector<4x256xi1>
    %43 = vector.broadcast %cst_16 : f32 to vector<4x256xf32>
    %44 = arith.select %42, %40, %43 : vector<4x256xi1>, vector<4x256xf32>
    %c44 = arith.constant 44 : index
    %c0_17 = arith.constant 0 : index
    %45 = vector.load %arg9[%c44, %c0_17] : memref<224x256xf32, #tpu.memory_space<vmem>>, vector<4x256xf32>
    tpu.vector_store %arg9[%c44, %c0_17], %44 {strides = array<i32>} : memref<224x256xf32, #tpu.memory_space<vmem>>, vector<4x256xf32>,
    %46 = arith.andi %8, %14 : vector<1x256xi1>
    %c15_i32_18 = arith.constant 15 : i32
    %47 = tpu.dynamic_rotate %3 by %c15_i32_18 dim 1 : vector<20x256xf32>, i32 -> vector<20x256xf32>
    %cst_19 = arith.constant 0.000000e+00 : f32
    %48 = vector.shape_cast %46 : vector<1x256xi1> to vector<1x256xi1>
    %49 = vector.broadcast %48 : vector<1x256xi1> to vector<20x256xi1>
    %50 = vector.broadcast %cst_19 : f32 to vector<20x256xf32>
    %51 = arith.select %49, %47, %50 : vector<20x256xi1>, vector<20x256xf32>
    %c48 = arith.constant 48 : index
    %c0_20 = arith.constant 0 : index
    %52 = vector.load %arg9[%c48, %c0_20] : memref<224x256xf32, #tpu.memory_space<vmem>>, vector<20x256xf32>
    tpu.vector_store %arg9[%c48, %c0_20], %51 {strides = array<i32>} : memref<224x256xf32, #tpu.memory_space<vmem>>, vector<20x256xf32>,
    %c15_i32_21 = arith.constant 15 : i32
    %53 = tpu.dynamic_rotate %1 by %c15_i32_21 dim 1 : vector<4x256xf32>, i32 -> vector<4x256xf32>
    %cst_22 = arith.constant 0.000000e+00 : f32
    %54 = vector.shape_cast %46 : vector<1x256xi1> to vector<1x256xi1>
    %55 = vector.broadcast %54 : vector<1x256xi1> to vector<4x256xi1>
    %56 = vector.broadcast %cst_22 : f32 to vector<4x256xf32>
    %57 = arith.select %55, %53, %56 : vector<4x256xi1>, vector<4x256xf32>
    %c68 = arith.constant 68 : index
    %c0_23 = arith.constant 0 : index
    %58 = vector.load %arg9[%c68, %c0_23] : memref<224x256xf32, #tpu.memory_space<vmem>>, vector<4x256xf32>
    tpu.vector_store %arg9[%c68, %c0_23], %57 {strides = array<i32>} : memref<224x256xf32, #tpu.memory_space<vmem>>, vector<4x256xf32>,
    %c1_i32_24 = arith.constant 1 : i32
    %59 = tpu.dynamic_rotate %3 by %c1_i32_24 dim 1 : vector<20x256xf32>, i32 -> vector<20x256xf32>
    %cst_25 = arith.constant 0.000000e+00 : f32
    %60 = vector.shape_cast %12 : vector<1x256xi1> to vector<1x256xi1>
    %61 = vector.broadcast %60 : vector<1x256xi1> to vector<20x256xi1>
    %62 = vector.broadcast %cst_25 : f32 to vector<20x256xf32>
    %63 = arith.select %61, %59, %62 : vector<20x256xi1>, vector<20x256xf32>
    %c72 = arith.constant 72 : index
    %c0_26 = arith.constant 0 : index
    %64 = vector.load %arg9[%c72, %c0_26] : memref<224x256xf32, #tpu.memory_space<vmem>>, vector<20x256xf32>
    tpu.vector_store %arg9[%c72, %c0_26], %63 {strides = array<i32>} : memref<224x256xf32, #tpu.memory_space<vmem>>, vector<20x256xf32>,
    %c1_i32_27 = arith.constant 1 : i32
    %65 = tpu.dynamic_rotate %1 by %c1_i32_27 dim 1 : vector<4x256xf32>, i32 -> vector<4x256xf32>
    %cst_28 = arith.constant 0.000000e+00 : f32
    %66 = vector.shape_cast %12 : vector<1x256xi1> to vector<1x256xi1>
    %67 = vector.broadcast %66 : vector<1x256xi1> to vector<4x256xi1>
    %68 = vector.broadcast %cst_28 : f32 to vector<4x256xf32>
    %69 = arith.select %67, %65, %68 : vector<4x256xi1>, vector<4x256xf32>
    %c92 = arith.constant 92 : index
    %c0_29 = arith.constant 0 : index
    %70 = vector.load %arg9[%c92, %c0_29] : memref<224x256xf32, #tpu.memory_space<vmem>>, vector<4x256xf32>
    tpu.vector_store %arg9[%c92, %c0_29], %69 {strides = array<i32>} : memref<224x256xf32, #tpu.memory_space<vmem>>, vector<4x256xf32>,
    %c96 = arith.constant 96 : index
    %c0_30 = arith.constant 0 : index
    %71 = vector.load %arg9[%c96, %c0_30] : memref<224x256xf32, #tpu.memory_space<vmem>>, vector<20x256xf32>
    tpu.vector_store %arg9[%c96, %c0_30], %3 {strides = array<i32>} : memref<224x256xf32, #tpu.memory_space<vmem>>, vector<20x256xf32>,
    %c116 = arith.constant 116 : index
    %c0_31 = arith.constant 0 : index
    %72 = vector.load %arg9[%c116, %c0_31] : memref<224x256xf32, #tpu.memory_space<vmem>>, vector<4x256xf32>
    tpu.vector_store %arg9[%c116, %c0_31], %1 {strides = array<i32>} : memref<224x256xf32, #tpu.memory_space<vmem>>, vector<4x256xf32>,
    %c255_i32 = arith.constant 255 : i32
    %73 = tpu.dynamic_rotate %3 by %c255_i32 dim 1 : vector<20x256xf32>, i32 -> vector<20x256xf32>
    %cst_32 = arith.constant 0.000000e+00 : f32
    %74 = vector.shape_cast %14 : vector<1x256xi1> to vector<1x256xi1>
    %75 = vector.broadcast %74 : vector<1x256xi1> to vector<20x256xi1>
    %76 = vector.broadcast %cst_32 : f32 to vector<20x256xf32>
    %77 = arith.select %75, %73, %76 : vector<20x256xi1>, vector<20x256xf32>
    %c120 = arith.constant 120 : index
    %c0_33 = arith.constant 0 : index
    %78 = vector.load %arg9[%c120, %c0_33] : memref<224x256xf32, #tpu.memory_space<vmem>>, vector<20x256xf32>
    tpu.vector_store %arg9[%c120, %c0_33], %77 {strides = array<i32>} : memref<224x256xf32, #tpu.memory_space<vmem>>, vector<20x256xf32>,
    %c255_i32_34 = arith.constant 255 : i32
    %79 = tpu.dynamic_rotate %1 by %c255_i32_34 dim 1 : vector<4x256xf32>, i32 -> vector<4x256xf32>
    %cst_35 = arith.constant 0.000000e+00 : f32
    %80 = vector.shape_cast %14 : vector<1x256xi1> to vector<1x256xi1>
    %81 = vector.broadcast %80 : vector<1x256xi1> to vector<4x256xi1>
    %82 = vector.broadcast %cst_35 : f32 to vector<4x256xf32>
    %83 = arith.select %81, %79, %82 : vector<4x256xi1>, vector<4x256xf32>
    %c140 = arith.constant 140 : index
    %c0_36 = arith.constant 0 : index
    %84 = vector.load %arg9[%c140, %c0_36] : memref<224x256xf32, #tpu.memory_space<vmem>>, vector<4x256xf32>
    tpu.vector_store %arg9[%c140, %c0_36], %83 {strides = array<i32>} : memref<224x256xf32, #tpu.memory_space<vmem>>, vector<4x256xf32>,
    %85 = arith.andi %10, %12 : vector<1x256xi1>
    %c241_i32 = arith.constant 241 : i32
    %86 = tpu.dynamic_rotate %3 by %c241_i32 dim 1 : vector<20x256xf32>, i32 -> vector<20x256xf32>
    %cst_37 = arith.constant 0.000000e+00 : f32
    %87 = vector.shape_cast %85 : vector<1x256xi1> to vector<1x256xi1>
    %88 = vector.broadcast %87 : vector<1x256xi1> to vector<20x256xi1>
    %89 = vector.broadcast %cst_37 : f32 to vector<20x256xf32>
    %90 = arith.select %88, %86, %89 : vector<20x256xi1>, vector<20x256xf32>
    %c144 = arith.constant 144 : index
    %c0_38 = arith.constant 0 : index
    %91 = vector.load %arg9[%c144, %c0_38] : memref<224x256xf32, #tpu.memory_space<vmem>>, vector<20x256xf32>
    tpu.vector_store %arg9[%c144, %c0_38], %90 {strides = array<i32>} : memref<224x256xf32, #tpu.memory_space<vmem>>, vector<20x256xf32>,
    %c241_i32_39 = arith.constant 241 : i32
    %92 = tpu.dynamic_rotate %1 by %c241_i32_39 dim 1 : vector<4x256xf32>, i32 -> vector<4x256xf32>
    %cst_40 = arith.constant 0.000000e+00 : f32
    %93 = vector.shape_cast %85 : vector<1x256xi1> to vector<1x256xi1>
    %94 = vector.broadcast %93 : vector<1x256xi1> to vector<4x256xi1>
    %95 = vector.broadcast %cst_40 : f32 to vector<4x256xf32>
    %96 = arith.select %94, %92, %95 : vector<4x256xi1>, vector<4x256xf32>
    %c164 = arith.constant 164 : index
    %c0_41 = arith.constant 0 : index
    %97 = vector.load %arg9[%c164, %c0_41] : memref<224x256xf32, #tpu.memory_space<vmem>>, vector<4x256xf32>
    tpu.vector_store %arg9[%c164, %c0_41], %96 {strides = array<i32>} : memref<224x256xf32, #tpu.memory_space<vmem>>, vector<4x256xf32>,
    %c240_i32_42 = arith.constant 240 : i32
    %98 = tpu.dynamic_rotate %3 by %c240_i32_42 dim 1 : vector<20x256xf32>, i32 -> vector<20x256xf32>
    %cst_43 = arith.constant 0.000000e+00 : f32
    %99 = vector.shape_cast %10 : vector<1x256xi1> to vector<1x256xi1>
    %100 = vector.broadcast %99 : vector<1x256xi1> to vector<20x256xi1>
    %101 = vector.broadcast %cst_43 : f32 to vector<20x256xf32>
    %102 = arith.select %100, %98, %101 : vector<20x256xi1>, vector<20x256xf32>
    %c168 = arith.constant 168 : index
    %c0_44 = arith.constant 0 : index
    %103 = vector.load %arg9[%c168, %c0_44] : memref<224x256xf32, #tpu.memory_space<vmem>>, vector<20x256xf32>
    tpu.vector_store %arg9[%c168, %c0_44], %102 {strides = array<i32>} : memref<224x256xf32, #tpu.memory_space<vmem>>, vector<20x256xf32>,
    %c240_i32_45 = arith.constant 240 : i32
    %104 = tpu.dynamic_rotate %1 by %c240_i32_45 dim 1 : vector<4x256xf32>, i32 -> vector<4x256xf32>
    %cst_46 = arith.constant 0.000000e+00 : f32
    %105 = vector.shape_cast %10 : vector<1x256xi1> to vector<1x256xi1>
    %106 = vector.broadcast %105 : vector<1x256xi1> to vector<4x256xi1>
    %107 = vector.broadcast %cst_46 : f32 to vector<4x256xf32>
    %108 = arith.select %106, %104, %107 : vector<4x256xi1>, vector<4x256xf32>
    %c188 = arith.constant 188 : index
    %c0_47 = arith.constant 0 : index
    %109 = vector.load %arg9[%c188, %c0_47] : memref<224x256xf32, #tpu.memory_space<vmem>>, vector<4x256xf32>
    tpu.vector_store %arg9[%c188, %c0_47], %108 {strides = array<i32>} : memref<224x256xf32, #tpu.memory_space<vmem>>, vector<4x256xf32>,
    %110 = arith.andi %10, %14 : vector<1x256xi1>
    %c239_i32 = arith.constant 239 : i32
    %111 = tpu.dynamic_rotate %3 by %c239_i32 dim 1 : vector<20x256xf32>, i32 -> vector<20x256xf32>
    %cst_48 = arith.constant 0.000000e+00 : f32
    %112 = vector.shape_cast %110 : vector<1x256xi1> to vector<1x256xi1>
    %113 = vector.broadcast %112 : vector<1x256xi1> to vector<20x256xi1>
    %114 = vector.broadcast %cst_48 : f32 to vector<20x256xf32>
    %115 = arith.select %113, %111, %114 : vector<20x256xi1>, vector<20x256xf32>
    %c192 = arith.constant 192 : index
    %c0_49 = arith.constant 0 : index
    %116 = vector.load %arg9[%c192, %c0_49] : memref<224x256xf32, #tpu.memory_space<vmem>>, vector<20x256xf32>
    tpu.vector_store %arg9[%c192, %c0_49], %115 {strides = array<i32>} : memref<224x256xf32, #tpu.memory_space<vmem>>, vector<20x256xf32>,
    %c239_i32_50 = arith.constant 239 : i32
    %117 = tpu.dynamic_rotate %1 by %c239_i32_50 dim 1 : vector<4x256xf32>, i32 -> vector<4x256xf32>
    %cst_51 = arith.constant 0.000000e+00 : f32
    %118 = vector.shape_cast %110 : vector<1x256xi1> to vector<1x256xi1>
    %119 = vector.broadcast %118 : vector<1x256xi1> to vector<4x256xi1>
    %120 = vector.broadcast %cst_51 : f32 to vector<4x256xf32>
    %121 = arith.select %119, %117, %120 : vector<4x256xi1>, vector<4x256xf32>
    %c212 = arith.constant 212 : index
    %c0_52 = arith.constant 0 : index
    %122 = vector.load %arg9[%c212, %c0_52] : memref<224x256xf32, #tpu.memory_space<vmem>>, vector<4x256xf32>
    tpu.vector_store %arg9[%c212, %c0_52], %121 {strides = array<i32>} : memref<224x256xf32, #tpu.memory_space<vmem>>, vector<4x256xf32>,
    %c0_53 = arith.constant 0 : index
    %c0_54 = arith.constant 0 : index
    %123 = vector.load %arg4[%c0_53, %c0_54] : memref<96x224xf32, #tpu.memory_space<vmem>>, vector<96x224xf32>
    %c0_55 = arith.constant 0 : index
    %c0_56 = arith.constant 0 : index
    %124 = vector.load %arg9[%c0_55, %c0_56] : memref<224x256xf32, #tpu.memory_space<vmem>>, vector<224x256xf32>
    %cst_57 = arith.constant dense<0.000000e+00> : vector<96x256xf32>
    %125 = tpu.matmul %123, %124, %cst_57 {dimension_numbers = #tpu.dot_dimension_numbers<[1], [0], [0], [1], [0, 0, 1, 1], [], []>} : vector<96x224xf32>, vector<224x256xf32>, vector<96x256xf32> -> vector<96x256xf32>
    %126 = vector.extract_strided_slice %125 {offsets = [0, 0], sizes = [20, 256], strides = [1, 1]} : vector<96x256xf32> to vector<20x256xf32>
    %cst_58 = arith.constant 5.000000e-01 : f32
    %127 = vector.broadcast %cst_58 : f32 to vector<20x256xf32>
    %128 = arith.mulf %127, %126 : vector<20x256xf32>
    %129 = math.tanh %128 : vector<20x256xf32>
    %cst_59 = arith.constant 5.000000e-01 : f32
    %130 = vector.broadcast %cst_59 : f32 to vector<20x256xf32>
    %131 = arith.mulf %130, %129 : vector<20x256xf32>
    %cst_60 = arith.constant 5.000000e-01 : f32
    %132 = vector.broadcast %cst_60 : f32 to vector<20x256xf32>
    %133 = arith.addf %131, %132 : vector<20x256xf32>
    %134 = vector.extract_strided_slice %125 {offsets = [24, 0], sizes = [20, 256], strides = [1, 1]} : vector<96x256xf32> to vector<20x256xf32>
    %cst_61 = arith.constant 5.000000e-01 : f32
    %135 = vector.broadcast %cst_61 : f32 to vector<20x256xf32>
    %136 = arith.mulf %135, %134 : vector<20x256xf32>
    %137 = math.tanh %136 : vector<20x256xf32>
    %cst_62 = arith.constant 5.000000e-01 : f32
    %138 = vector.broadcast %cst_62 : f32 to vector<20x256xf32>
    %139 = arith.mulf %138, %137 : vector<20x256xf32>
    %cst_63 = arith.constant 5.000000e-01 : f32
    %140 = vector.broadcast %cst_63 : f32 to vector<20x256xf32>
    %141 = arith.addf %139, %140 : vector<20x256xf32>
    %142 = vector.extract_strided_slice %125 {offsets = [48, 0], sizes = [20, 256], strides = [1, 1]} : vector<96x256xf32> to vector<20x256xf32>
    %cst_64 = arith.constant 5.000000e-01 : f32
    %143 = vector.broadcast %cst_64 : f32 to vector<20x256xf32>
    %144 = arith.mulf %143, %142 : vector<20x256xf32>
    %145 = math.tanh %144 : vector<20x256xf32>
    %cst_65 = arith.constant 5.000000e-01 : f32
    %146 = vector.broadcast %cst_65 : f32 to vector<20x256xf32>
    %147 = arith.mulf %146, %145 : vector<20x256xf32>
    %cst_66 = arith.constant 5.000000e-01 : f32
    %148 = vector.broadcast %cst_66 : f32 to vector<20x256xf32>
    %149 = arith.addf %147, %148 : vector<20x256xf32>
    %150 = vector.extract_strided_slice %125 {offsets = [72, 0], sizes = [20, 256], strides = [1, 1]} : vector<96x256xf32> to vector<20x256xf32>
    %151 = math.tanh %150 : vector<20x256xf32>
    %c0_67 = arith.constant 0 : index
    %c0_68 = arith.constant 0 : index
    %c0_69 = arith.constant 0 : index
    %152 = vector.load %arg3[%c0_67, %c0_68, %c0_69] : memref<1x20x256xf32, #tpu.memory_space<vmem>>, vector<1x20x256xf32>
    %153 = vector.shape_cast %152 : vector<1x20x256xf32> to vector<20x256xf32>
    %154 = arith.mulf %141, %153 : vector<20x256xf32>
    %155 = arith.mulf %133, %151 : vector<20x256xf32>
    %156 = arith.addf %154, %155 : vector<20x256xf32>
    %157 = math.tanh %156 : vector<20x256xf32>
    %158 = arith.mulf %149, %157 : vector<20x256xf32>
    %c0_70 = arith.constant 0 : index
    %c0_71 = arith.constant 0 : index
    %c0_72 = arith.constant 0 : index
    %159 = vector.load %arg7[%c0_70, %c0_71, %c0_72] : memref<1x20x256xf32, #tpu.memory_space<vmem>>, vector<1x20x256xf32>
    %160 = vector.shape_cast %159 : vector<1x20x256xf32> to vector<20x256xf32>
    %161 = vector.shape_cast %158 : vector<20x256xf32> to vector<1x20x256xf32>
    tpu.vector_store %arg7[%c0_70, %c0_71, %c0_72], %161 {strides = array<i32>} : memref<1x20x256xf32, #tpu.memory_space<vmem>>, vector<1x20x256xf32>,
    %c0_73 = arith.constant 0 : index
    %c0_74 = arith.constant 0 : index
    %c0_75 = arith.constant 0 : index
    %162 = vector.load %arg8[%c0_73, %c0_74, %c0_75] : memref<1x20x256xf32, #tpu.memory_space<vmem>>, vector<1x20x256xf32>
    %163 = vector.shape_cast %162 : vector<1x20x256xf32> to vector<20x256xf32>
    %164 = vector.shape_cast %156 : vector<20x256xf32> to vector<1x20x256xf32>
    tpu.vector_store %arg8[%c0_73, %c0_74, %c0_75], %164 {strides = array<i32>} : memref<1x20x256xf32, #tpu.memory_space<vmem>>, vector<1x20x256xf32>,
    %c0_76 = arith.constant 0 : index
    %c0_77 = arith.constant 0 : index
    %165 = vector.load %arg5[%c0_76, %c0_77] : memref<4x20xf32, #tpu.memory_space<vmem>>, vector<4x20xf32>
    %cst_78 = arith.constant dense<0.000000e+00> : vector<4x256xf32>
    %166 = tpu.matmul %165, %158, %cst_78 {dimension_numbers = #tpu.dot_dimension_numbers<[1], [0], [0], [1], [0, 0, 1, 1], [], []>} : vector<4x20xf32>, vector<20x256xf32>, vector<4x256xf32> -> vector<4x256xf32>
    %c0_79 = arith.constant 0 : index
    %c0_80 = arith.constant 0 : index
    %c0_81 = arith.constant 0 : index
    %167 = vector.load %arg6[%c0_79, %c0_80, %c0_81] : memref<1x4x256xf32, #tpu.memory_space<vmem>>, vector<1x4x256xf32>
    %168 = vector.shape_cast %167 : vector<1x4x256xf32> to vector<4x256xf32>
    %169 = vector.shape_cast %166 : vector<4x256xf32> to vector<1x4x256xf32>
    tpu.vector_store %arg6[%c0_79, %c0_80, %c0_81], %169 {strides = array<i32>} : memref<1x4x256xf32, #tpu.memory_space<vmem>>, vector<1x4x256xf32>,
    return
  }
  func.func @transform_0(%arg0: i32) -> (i32, i32, i32) {
    %c0_i32 = arith.constant 0 : i32
    %c0_i32_0 = arith.constant 0 : i32
    %c0_i32_1 = arith.constant 0 : i32
    return %arg0, %c0_i32, %c0_i32_0 : i32, i32, i32
  }
  func.func @transform_1(%arg0: i32) -> (i32, i32, i32) {
    %c0_i32 = arith.constant 0 : i32
    %c0_i32_0 = arith.constant 0 : i32
    %c0_i32_1 = arith.constant 0 : i32
    return %arg0, %c0_i32, %c0_i32_0 : i32, i32, i32
  }
  func.func @transform_2(%arg0: i32) -> (i32, i32, i32) {
    %c0_i32 = arith.constant 0 : i32
    %c0_i32_0 = arith.constant 0 : i32
    %c0_i32_1 = arith.constant 0 : i32
    return %arg0, %c0_i32, %c0_i32_0 : i32, i32, i32
  }
  func.func @transform_3(%arg0: i32) -> (i32, i32) {
    %c0_i32 = arith.constant 0 : i32
    %c0_i32_0 = arith.constant 0 : i32
    %c0_i32_1 = arith.constant 0 : i32
    return %c0_i32, %c0_i32_0 : i32, i32
  }
  func.func @transform_4(%arg0: i32) -> (i32, i32) {
    %c0_i32 = arith.constant 0 : i32
    %c0_i32_0 = arith.constant 0 : i32
    %c0_i32_1 = arith.constant 0 : i32
    return %c0_i32, %c0_i32_0 : i32, i32
  }
  func.func @transform_5(%arg0: i32) -> (i32, i32, i32) {
    %c0_i32 = arith.constant 0 : i32
    %c0_i32_0 = arith.constant 0 : i32
    %c0_i32_1 = arith.constant 0 : i32
    return %arg0, %c0_i32, %c0_i32_0 : i32, i32, i32
  }
  func.func @transform_6(%arg0: i32) -> (i32, i32, i32) {
    %c0_i32 = arith.constant 0 : i32
    %c0_i32_0 = arith.constant 0 : i32
    %c0_i32_1 = arith.constant 0 : i32
    return %arg0, %c0_i32, %c0_i32_0 : i32, i32, i32
  }
  func.func @transform_7(%arg0: i32) -> (i32, i32, i32) {
    %c0_i32 = arith.constant 0 : i32
    %c0_i32_0 = arith.constant 0 : i32
    %c0_i32_1 = arith.constant 0 : i32
    return %arg0, %c0_i32, %c0_i32_0 : i32, i32, i32
  }
}

</mosaic_0001>

<bundles_post_ra>
// kernel: _forward.1
= control target key start
LH: loop header
LB: loop body
LE: loop exit
PB: predicated region body
PF: predicated region fallthrough
CT: control target
= control target key end

     0   :  { %s1817_s24 = smov 0   ;;  %s2389_s0 = inlined_call_operand.vmem [shape: f32[2,4,256], index: 0, kind: input, shape index: {}]   ;;  %s2390_s1 = inlined_call_operand.vmem [shape: f32[2,20,256], index: 1, kind: input, shape index: {}]   ;;  %s2391_s2 = inlined_call_operand.vmem [shape: f32[2,20,256], index: 2, kind: input, shape index: {}]   ;;  %s2392_s3 = inlined_call_operand.vmem [shape: f32[96,224], index: 3, kind: input, shape index: {}]   ;;  %s2393_s4 = inlined_call_operand.vmem [shape: f32[4,20], index: 4, kind: input, shape index: {}]   ;;  %s2394_s5 = inlined_call_operand.vmem [shape: f32[2,4,256], index: 5, kind: output, shape index: {0}]   ;;  %s2395_s6 = inlined_call_operand.vmem [shape: f32[2,20,256], index: 6, kind: output, shape index: {1}]   ;;  %s2396_s7 = inlined_call_operand.vmem [shape: f32[2,20,256], index: 7, kind: output, shape index: {2}]  }
   0x1 LB: > { %s1425_s25 = sadd.s32 4294967295, %s1764_s24   ;;  %p1429_p0 = scmp.ge.s32.totalorder %s1764_s24, 1  ;;  %s1764_s24 = sphi %s1817_s24, %s18_s24  }
   0x2   : > { %p262_p1 = scmp.lt.s32.totalorder %s1764_s24, 3 }
   0x4   : > { %p263_p2 = pnand %p1429_p0, %p262_p1 }
   0x5   : > { %p314_p3 = scmp.lt.s32.totalorder (!%p263_p2), %s1425_s25, 1  ;;  %s1766_s11 = smov (!%p263_p2), 17   ;;  %v351_v9 = vlaneseq (!%p263_p2)  ;;  %v813_v35 = vld [vmem:[%s2392_s3 + $0x8] sm:$0xff] (!%p263_p2)  ;;  %vm892_vm6 = vcmask (!%p263_p2), 785408   ;;  %v827_v36 = vld [vmem:[%s2392_s3 + $0x78] sm:$0xff] (!%p263_p2)  ;;  %vm1774_vm10 = vmmov (!%p263_p2), 1  }
   0x6   : > { %266 = sbr.rel (%p263_p2) target bundleno = 761 (0x2f9), region = 40  ;;  %s1767_s12 = smov (!%p263_p2), 16   ;;  %1439 = vmatprep.mubr.msk.f32.mxu0 (!%p263_p2), %vm892_vm6, %v813_v35  ;;  %1446 = vmatprep.mubr.msk.f32.mxu1 (!%p263_p2), %vm892_vm6, %v827_v36 }
   0x7   : > { %s1768_s13 = smov (!%p263_p2), 15   ;;  %s1769_s14 = smov (!%p263_p2), 1   ;;  %v1917_v10 = vand.u32 (!%p263_p2), 127, %v351_v9  ;;  %v1935_v16 = vshrl.u32 (!%p263_p2), %v351_v9, 7  ;;  %v812_v9 = vld [vmem:[%s2392_s3] sm:$0xff] (!%p263_p2) }
   0x8   : > { %s1770_s15 = smov (!%p263_p2), 127   ;;  %s1771_s16 = smov (!%p263_p2), 113  }
   0x9   : > { %s1772_s17 = smov (!%p263_p2), 112   ;;  %v1922_v11 = vadd.s32 (!%p263_p2), 128, %v1917_v10  ;;  %v358_v12 = vand.u32 (!%p263_p2), 15, %v1917_v10  ;;  %s1773_s18 = smov (!%p263_p2), 111   ;;  %vm368_vm0 = vcmp.ge.s32.totalorder (!%p263_p2), %v1917_v10, 16  ;;  %vm397_vm2 = vcmp.lt.s32.totalorder (!%p263_p2), %v1917_v10, 17 }
   0xa   : > { %vm378_vm3 = vcmp.eq.s32.totalorder (!%p263_p2), %v1935_v16, 0  ;;  %vm451_vm9 = vcmp.lt.s32.totalorder (!%p263_p2), %v1917_v10, 16  ;;  %vm1638_vm11 = vmpackc.low (!%p263_p2), %vm368_vm0, %vm1774_vm10  ;;  %vm504_vm13 = vcmp.lt.s32.totalorder (!%p263_p2), %v1917_v10, 15  ;;  %v815_v16 = vld [vmem:[%s2392_s3 + $0x18] sm:$0xff] (!%p263_p2) }
   0xb   : > { %v365_v13 = vand.u32 (!%p263_p2), 15, %v1922_v11  ;;  %vm1931_vm1 = vcmp.ge.s32.totalorder (!%p263_p2), %v358_v12, 1  ;;  %vm2023_vm12 = vcmp.lt.s32.totalorder (!%p263_p2), %v358_v12, 15 }
   0xc   : > { %vm1951_vm5 = vmand (!%p263_p2), %vm368_vm0, %vm1931_vm1 }
   0xd   : > { %s2414_s25 = smov (!%p314_p3, %s1425_s25), 1  ;;  %vm1943_vm4 = vcmp.ge.s32.totalorder %v365_v13, 1  ;;  %vm1632_vm8 = vmpackc.low %vm1951_vm5, %vm1951_vm5  ;;  %vm2030_vm14 = vcmp.lt.s32.totalorder %v365_v13, 15 }
   0xe   : > { %s1456_s26 = sshll.u32 %s2414_s25, 3  ;;  %s1829_s27 = smul.u32 48, %s2414_s25  ;;  %vm1626_vm7 = vmpackc.low %vm1943_vm4, %vm1943_vm4 }
   0xf   : > { %s318_s30 = scalar_lea.vmem %s2389_s0, %s1456_s26  ;;  %vm2038_vm15 = vmand %vm368_vm0, %vm2023_vm12  ;;  %s333_s22 = scalar_lea.vmem %s2394_s5, %s1456_s26 }
  0x10   : > { %v1836_v0 = vld [vmem:[%s318_s30] sm:$0xff]  ;;  %s323_s10 = scalar_lea.vmem %s2390_s1, %s1829_s27 }
  0x11   : > { %423 = vrot.lane.b32.xlu0 %v1836_v0, %s1766_s11  ;;  %603 = vst [vmem:[#allocation2 + $0xe8] sm:$0xf0] %v1836_v0  ;;  %v1844_v1 = vld [vmem:[%s323_s10 + $0x8] sm:$0xff]  ;;  %v1846_v2 = vld [vmem:[%s323_s10] sm:$0xff]  ;;  %v1848_v3 = vld [vmem:[%s323_s10 + $0x18] sm:$0xff]  ;;  %v1863_v7 = vcombine.high %v1836_v0, %v1836_v0  ;;  %v600_v8 = vcombine.low %v1836_v0, %v1836_v0 }
  0x12   : > { %391 = vrot.lane.b32.xlu1 %v1844_v1, %s1766_s11  ;;  %v1851_v4 = vld [vmem:[%s323_s10 + $0x10] sm:$0xff]  ;;  %v1853_v5 = vld [vmem:[%s323_s10 + $0x20] sm:$0xf]  ;;  %v1855_v6 = vld [vmem:[%s323_s10 + $0x28] sm:$0xf] }
  0x13   : > { %598 = vst [vmem:[#allocation2 + $0xe0] sm:$0xf] %v1853_v5  ;;  %599 = vst [vmem:[#allocation2 + $0xe8] sm:$0xf] %v1855_v6 }
  0x14   : > { %602 = vst [vmem:[#allocation2 + $0xe0] sm:$0xf0] %v600_v8 }
  0x15   : > { %385 = vrot.lane.b32.xlu0 %v1846_v2, %s1766_s11 }
  0x16   : > { %393 = vrot.lane.b32.xlu1 %v1848_v3, %s1766_s11 }
  0x19   : > { %387 = vrot.lane.b32.xlu0 %v1851_v4, %s1766_s11 }
  0x1a   : > { %425 = vrot.lane.b32.xlu1 %v1863_v7, %s1766_s11 }
  0x1d   : > { %389 = vrot.lane.b32.xlu0 %v1853_v5, %s1766_s11 }
  0x1e   : > { %395 = vrot.lane.b32.xlu1 %v1855_v6, %s1766_s11 }
  0x21   : > { %439 = vrot.lane.b32.xlu0 %v1846_v2, %s1767_s12 }
  0x22   : > { %445 = vrot.lane.b32.xlu1 %v1844_v1, %s1767_s12 }
  0x25   : > { %474 = vrot.lane.b32.xlu0 %v1836_v0, %s1767_s12 }
  0x26   : > { %476 = vrot.lane.b32.xlu1 %v1863_v7, %s1767_s12 }
  0x29   : > { %441 = vrot.lane.b32.xlu0 %v1851_v4, %s1767_s12 }
  0x2a   : > { %443 = vrot.lane.b32.xlu1 %v1853_v5, %s1767_s12 }
  0x2d   : > { %447 = vrot.lane.b32.xlu0 %v1848_v3, %s1767_s12 }
  0x2e   : > { %449 = vrot.lane.b32.xlu1 %v1855_v6, %s1767_s12  ;;  %s2350_s12 = scalar_lea.vmem %s2391_s2, %s1829_s27 }
  0x31   : > { %492 = vrot.lane.b32.xlu0 %v1846_v2, %s1768_s13 }
  0x32   : > { %494 = vrot.lane.b32.xlu1 %v1851_v4, %s1768_s13 }
  0x35   : > { %498 = vrot.lane.b32.xlu0 %v1844_v1, %s1768_s13 }
  0x36   : > { %500 = vrot.lane.b32.xlu1 %v1848_v3, %s1768_s13 }
  0x39   : > { %527 = vrot.lane.b32.xlu0 %v1836_v0, %s1768_s13 }
  0x3a   : > { %529 = vrot.lane.b32.xlu1 %v1863_v7, %s1768_s13 }
  0x3d   : > { %496 = vrot.lane.b32.xlu0 %v1853_v5, %s1768_s13 }
  0x3e   : > { %502 = vrot.lane.b32.xlu1 %v1855_v6, %s1768_s13 }
  0x41   : > { %543 = vrot.lane.b32.xlu0 %v1846_v2, %s1769_s14 }
  0x42   : > { %549 = vrot.lane.b32.xlu1 %v1844_v1, %s1769_s14 }
  0x45   : > { %578 = vrot.lane.b32.xlu0 %v1836_v0, %s1769_s14 }
  0x46   : > { %580 = vrot.lane.b32.xlu1 %v1863_v7, %s1769_s14 }
  0x49   : > { %545 = vrot.lane.b32.xlu0 %v1851_v4, %s1769_s14 }
  0x4a   : > { %547 = vrot.lane.b32.xlu1 %v1853_v5, %s1769_s14 }
  0x4d   : > { %551 = vrot.lane.b32.xlu0 %v1848_v3, %s1769_s14 }
  0x4e   : > { %553 = vrot.lane.b32.xlu1 %v1855_v6, %s1769_s14 }
  0x51   : > { %604 = vrot.lane.b32.xlu0 %v1846_v2, %s1770_s15 }
  0x52   : > { %610 = vrot.lane.b32.xlu1 %v1844_v1, %s1770_s15 }
  0x55   : > { %639 = vrot.lane.b32.xlu0 %v1836_v0, %s1770_s15 }
  0x56   : > { %641 = vrot.lane.b32.xlu1 %v1863_v7, %s1770_s15 }
  0x59   : > { %606 = vrot.lane.b32.xlu0 %v1851_v4, %s1770_s15 }
  0x5a   : > { %608 = vrot.lane.b32.xlu1 %v1853_v5, %s1770_s15 }
  0x5d   : > { %612 = vrot.lane.b32.xlu0 %v1848_v3, %s1770_s15 }
  0x5e   : > { %614 = vrot.lane.b32.xlu1 %v1855_v6, %s1770_s15  ;;  %s2362_s15 = scalar_lea.vmem %s2396_s7, %s1829_s27 }
  0x61   : > { %657 = vrot.lane.b32.xlu0 %v1846_v2, %s1771_s16 }
  0x62   : > { %659 = vrot.lane.b32.xlu1 %v1851_v4, %s1771_s16 }
  0x65   : > { %663 = vrot.lane.b32.xlu0 %v1844_v1, %s1771_s16 }
  0x66   : > { %665 = vrot.lane.b32.xlu1 %v1848_v3, %s1771_s16 }
  0x69   : > { %692 = vrot.lane.b32.xlu0 %v1836_v0, %s1771_s16 }
  0x6a   : > { %694 = vrot.lane.b32.xlu1 %v1863_v7, %s1771_s16 }
  0x6d   : > { %661 = vrot.lane.b32.xlu0 %v1853_v5, %s1771_s16 }
  0x6e   : > { %667 = vrot.lane.b32.xlu1 %v1855_v6, %s1771_s16 }
  0x71   : > { %708 = vrot.lane.b32.xlu0 %v1846_v2, %s1772_s17 }
  0x72   : > { %714 = vrot.lane.b32.xlu1 %v1844_v1, %s1772_s17 }
  0x75   : > { %743 = vrot.lane.b32.xlu0 %v1836_v0, %s1772_s17 }
  0x76   : > { %745 = vrot.lane.b32.xlu1 %v1863_v7, %s1772_s17 }
  0x79   : > { %710 = vrot.lane.b32.xlu0 %v1851_v4, %s1772_s17 }
  0x7a   : > { %712 = vrot.lane.b32.xlu1 %v1853_v5, %s1772_s17 }
  0x7d   : > { %716 = vrot.lane.b32.xlu0 %v1848_v3, %s1772_s17 }
  0x7e   : > { %718 = vrot.lane.b32.xlu1 %v1855_v6, %s1772_s17 }
  0x81   : > { %761 = vrot.lane.b32.xlu0 %v1846_v2, %s1773_s18 }
  0x82   : > { %763 = vrot.lane.b32.xlu1 %v1851_v4, %s1773_s18 }
  0x83   : > { %v424_v14 = vpop.permute.xlu0 %423 }
  0x84   : > { %v392_v17 = vpop.permute.xlu1 %391 }
  0x85   : > { %767 = vrot.lane.b32.xlu0 %v1844_v1, %s1773_s18 }
  0x86   : > { %769 = vrot.lane.b32.xlu1 %v1848_v3, %s1773_s18 }
  0x87   : > { %v386_v20 = vpop.permute.xlu0 %385 }
  0x88   : > { %v398_v21 = vsel %vm397_vm2, %v386_v20, %v392_v17  ;;  %v401_v22 = vsel %vm397_vm2, %v392_v17, %v386_v20  ;;  %v394_v23 = vpop.permute.xlu1 %393 }
  0x89   : > { %796 = vrot.lane.b32.xlu0 %v1836_v0, %s1773_s18 }
  0x8a   : > { %798 = vrot.lane.b32.xlu1 %v1863_v7, %s1773_s18 }
  0x8b   : > { %v388_v24 = vpop.permute.xlu0 %387 }
  0x8c   : > { %v399_v25 = vsel %vm397_vm2, %v388_v24, %v394_v23  ;;  %v402_v26 = vsel %vm397_vm2, %v394_v23, %v388_v24  ;;  %v426_v27 = vpop.permute.xlu1 %425 }
  0x8d   : > { %v427_v28 = vsel %vm397_vm2, %v424_v14, %v426_v27  ;;  %v428_v29 = vsel %vm397_vm2, %v426_v27, %v424_v14  ;;  %765 = vrot.lane.b32.xlu0 %v1853_v5, %s1773_s18  ;;  %v1627_v38 = vpack.c.bf16 %v399_v25, %v398_v21  ;;  %v1633_v41 = vpack.c.bf16 %v402_v26, %v401_v22 }
  0x8e   : > { %v429_v30 = vsel %vm1951_vm5, %v428_v29, 0.0  ;;  %v430_v31 = vsel %vm1943_vm4, %v427_v28, 0.0  ;;  %771 = vrot.lane.b32.xlu1 %v1855_v6, %s1773_s18  ;;  %s338_s18 = scalar_lea.vmem %s2395_s6, %s1829_s27 }
  0x8f   : > { %v433_v32 = vrot.slane %v429_v30, 4  ;;  %v434_v33 = vrot.slane %v430_v31, 4  ;;  %v390_v34 = vpop.permute.xlu0 %389  ;;  %1628 = vmatprep.subr.msk.bf16.mxu0 %vm1626_vm7, %v1627_v38  ;;  %1631 = vmatprep.subr.msk.bf16.mxu1 %vm1626_vm7, %v1627_v38  ;;  %vm555_vm7 = vcmp.lt.s32.totalorder %v1917_v10, 1 }
  0x90   : > { %v396_v37 = vpop.permute.xlu1 %395  ;;  %1634 = vmatpush1.bf16.msk.msra.mxu0 %vm1632_vm8, %v1633_v41  ;;  %1637 = vmatpush1.bf16.msk.msra.mxu1 %vm1632_vm8, %v1633_v41  ;;  %vm1662_vm8 = vmpackc.low %vm1943_vm4, %vm1774_vm10 }
  0x91   : > { %437 = vst [vmem:[#allocation2 + $0x20] sm:$0xf0] %v433_v32  ;;  %438 = vst [vmem:[#allocation2 + $0x28] sm:$0xf0] %v434_v33  ;;  %v400_v39 = vsel %vm397_vm2, %v390_v34, %v396_v37  ;;  %v403_v40 = vsel %vm397_vm2, %v396_v37, %v390_v34 }
  0x92   : > { %v412_v42 = vsel %vm1951_vm5, %v403_v40, 0.0  ;;  %v413_v43 = vsel %vm1943_vm4, %v400_v39, 0.0  ;;  %vm1644_vm2 = vmpackc.low %vm1774_vm10, %vm368_vm0 }
  0x93   : > { %418 = vst [vmem:[#allocation2 + $0x20] sm:$0xf] %v412_v42  ;;  %419 = vst [vmem:[#allocation2 + $0x28] sm:$0xf] %v413_v43  ;;  %v440_v44 = vpop.permute.xlu0 %439 }
  0x94   : > { %v446_v45 = vpop.permute.xlu1 %445  ;;  %vm1650_vm5 = vmpackc.low %vm2030_vm14, %vm2030_vm14 }
  0x95   : > { %v452_v46 = vsel %vm451_vm9, %v440_v44, %v446_v45  ;;  %v455_v47 = vsel %vm451_vm9, %v446_v45, %v440_v44 }
  0x97   : > { %v475_v48 = vpop.permute.xlu0 %474 }
  0x98   : > { %v477_v49 = vpop.permute.xlu1 %476 }
  0x99   : > { %v478_v50 = vsel %vm451_vm9, %v475_v48, %v477_v49  ;;  %v479_v51 = vsel %vm451_vm9, %v477_v49, %v475_v48 }
  0x9a   : > { %v480_v52 = vsel %vm368_vm0, %v479_v51, 0.0  ;;  %v485_v53 = vrot.slane %v478_v50, 4  ;;  %v841_v54 = vld [vmem:[#allocation2 + $0x28] sm:$0xff]  ;;  %v840_v55 = vld [vmem:[#allocation2 + $0x20] sm:$0xff] }
  0x9b   : > { %v484_v56 = vrot.slane %v480_v52, 4  ;;  %v442_v57 = vpop.permute.xlu0 %441  ;;  %v1462_v58 = vpack.c.bf16 %v452_v46, %v841_v54  ;;  %v1639_v60 = vpack.c.bf16 %v455_v47, %v840_v55 }
  0x9c   : > { %489 = vst [vmem:[#allocation2 + $0x58] sm:$0xf0] %v485_v53  ;;  %v444_v59 = vpop.permute.xlu1 %443 }
  0x9d   : > { %488 = vst [vmem:[#allocation2 + $0x50] sm:$0xf0] %v484_v56  ;;  %1463 = vmatprep.subr.bf16.mxu0 %v1462_v58  ;;  %1519 = vmatprep.subr.bf16.mxu1 %v1462_v58 }
  0x9e   : > { %1640 = vmatpush1.bf16.msk.msra.mxu0 %vm1638_vm11, %v1639_v60  ;;  %1643 = vmatpush1.bf16.msk.msra.mxu1 %vm1638_vm11, %v1639_v60  ;;  %vm616_vm11 = vcmp.lt.s32.totalorder %v1917_v10, 127 }
  0x9f   : > { %v448_v61 = vpop.permute.xlu0 %447 }
  0xa0   : > { %v453_v62 = vsel %vm451_vm9, %v442_v57, %v448_v61  ;;  %v456_v63 = vsel %vm451_vm9, %v448_v61, %v442_v57  ;;  %v450_v0 = vpop.permute.xlu1 %449 }
  0xa1   : > { %v454_v5 = vsel %vm451_vm9, %v444_v59, %v450_v0  ;;  %v457_v6 = vsel %vm451_vm9, %v450_v0, %v444_v59  ;;  %vm1668_vm9 = vmpackc.low %vm1931_vm1, %vm1774_vm10 }
  0xa2   : > { %v466_v7 = vsel %vm368_vm0, %v457_v6, 0.0  ;;  %473 = vst [vmem:[#allocation2 + $0x58] sm:$0xf] %v454_v5  ;;  %vm1656_vm0 = vmpackc.low %vm2038_vm15, %vm2038_vm15 }
  0xa3   : > { %472 = vst [vmem:[#allocation2 + $0x50] sm:$0xf] %v466_v7  ;;  %v493_v8 = vpop.permute.xlu0 %492 }
  0xa4   : > { %v495_v14 = vpop.permute.xlu1 %494 }
  0xa7   : > { %v499_v12 = vpop.permute.xlu0 %498 }
  0xa8   : > { %v505_v20 = vsel %vm504_vm13, %v493_v8, %v499_v12  ;;  %v508_v21 = vsel %vm504_vm13, %v499_v12, %v493_v8  ;;  %v501_v22 = vpop.permute.xlu1 %500 }
  0xa9   : > { %v506_v13 = vsel %vm504_vm13, %v495_v14, %v501_v22  ;;  %v509_v23 = vsel %vm504_vm13, %v501_v22, %v495_v14  ;;  %v847_v24 = vld [vmem:[#allocation2 + $0x58] sm:$0xff] }
  0xaa   : > { %v1466_v25 = vpack.c.bf16 %v847_v24, %v453_v62  ;;  %v846_v26 = vld [vmem:[#allocation2 + $0x50] sm:$0xff]  ;;  %v1651_v34 = vpack.c.bf16 %v506_v13, %v505_v20  ;;  %v1657_v41 = vpack.c.bf16 %v509_v23, %v508_v21 }
  0xab   : > { %v528_v27 = vpop.permute.xlu0 %527  ;;  %v1645_v31 = vpack.c.bf16 %v846_v26, %v456_v63 }
  0xac   : > { %1467 = vmatprep.subr.bf16.mxu0 %v1466_v25  ;;  %1520 = vmatprep.subr.bf16.mxu1 %v1466_v25  ;;  %v530_v28 = vpop.permute.xlu1 %529 }
  0xad   : > { %v531_v29 = vsel %vm504_vm13, %v528_v27, %v530_v28  ;;  %v532_v30 = vsel %vm504_vm13, %v530_v28, %v528_v27  ;;  %1646 = vmatpush1.bf16.msk.msra.mxu0 %vm1644_vm2, %v1645_v31  ;;  %1649 = vmatpush1.bf16.msk.msra.mxu1 %vm1644_vm2, %v1645_v31  ;;  %vm1686_vm2 = vmpackc.low %vm2030_vm14, %vm1774_vm10 }
  0xae   : > { %v533_v32 = vsel %vm2038_vm15, %v532_v30, 0.0  ;;  %v534_v33 = vsel %vm2030_vm14, %v531_v29, 0.0  ;;  %1652 = vmatprep.subr.msk.bf16.mxu0 %vm1650_vm5, %v1651_v34  ;;  %1655 = vmatprep.subr.msk.bf16.mxu1 %vm1650_vm5, %v1651_v34  ;;  %v1482_v29 = vpack.c.bf16 %v1848_v3, %v1844_v1  ;;  %v1484_v1 = vpack.c.bf16 %v1851_v4, %v1846_v2 }
  0xaf   : > { %v537_v35 = vrot.slane %v533_v32, 4  ;;  %v538_v36 = vrot.slane %v534_v33, 4  ;;  %v497_v37 = vpop.permute.xlu0 %496  ;;  %vm371_vm5 = vcmp.lt.s32.totalorder %v1922_v11, 240 }
  0xb0   : > { %v503_v38 = vpop.permute.xlu1 %502 }
  0xb1   : > { %541 = vst [vmem:[#allocation2 + $0x80] sm:$0xf0] %v537_v35  ;;  %542 = vst [vmem:[#allocation2 + $0x88] sm:$0xf0] %v538_v36  ;;  %v507_v39 = vsel %vm504_vm13, %v497_v37, %v503_v38  ;;  %v510_v40 = vsel %vm504_vm13, %v503_v38, %v497_v37  ;;  %1658 = vmatpush1.bf16.msk.msra.mxu0 %vm1656_vm0, %v1657_v41  ;;  %1661 = vmatpush1.bf16.msk.msra.mxu1 %vm1656_vm0, %v1657_v41  ;;  %v865_v35 = vld [vmem:[#allocation2 + $0xe8] sm:$0xff]  ;;  %vm669_vm0 = vcmp.lt.s32.totalorder %v1917_v10, 113 }
  0xb2   : > { %v519_v42 = vsel %vm2038_vm15, %v510_v40, 0.0  ;;  %v520_v43 = vsel %vm2030_vm14, %v507_v39, 0.0  ;;  %vm1674_vm13 = vmpackc.low %vm1774_vm10, %vm1943_vm4 }
  0xb3   : > { %525 = vst [vmem:[#allocation2 + $0x80] sm:$0xf] %v519_v42  ;;  %526 = vst [vmem:[#allocation2 + $0x88] sm:$0xf] %v520_v43  ;;  %v544_v44 = vpop.permute.xlu0 %543  ;;  %v864_v42 = vld [vmem:[#allocation2 + $0xe0] sm:$0xff] }
  0xb4   : > { %v550_v45 = vpop.permute.xlu1 %549  ;;  %vm1680_vm15 = vmpackc.low %vm1774_vm10, %vm1931_vm1 }
  0xb5   : > { %v556_v46 = vsel %vm555_vm7, %v544_v44, %v550_v45  ;;  %v559_v47 = vsel %vm555_vm7, %v550_v45, %v544_v44 }
  0xb7   : > { %v579_v48 = vpop.permute.xlu0 %578 }
  0xb8   : > { %v581_v49 = vpop.permute.xlu1 %580 }
  0xb9   : > { %v582_v50 = vsel %vm555_vm7, %v579_v48, %v581_v49  ;;  %v583_v51 = vsel %vm555_vm7, %v581_v49, %v579_v48 }
  0xba   : > { %v584_v52 = vsel %vm1931_vm1, %v583_v51, 0.0  ;;  %v585_v53 = vsel %vm1943_vm4, %v582_v50, 0.0  ;;  %v853_v54 = vld [vmem:[#allocation2 + $0x88] sm:$0xff]  ;;  %v852_v55 = vld [vmem:[#allocation2 + $0x80] sm:$0xff] }
  0xbb   : > { %v588_v56 = vrot.slane %v584_v52, 4  ;;  %v589_v57 = vrot.slane %v585_v53, 4  ;;  %v546_v58 = vpop.permute.xlu0 %545  ;;  %v1663_v60 = vpack.c.bf16 %v556_v46, %v853_v54  ;;  %v1669_v61 = vpack.c.bf16 %v559_v47, %v852_v55 }
  0xbc   : > { %v548_v59 = vpop.permute.xlu1 %547 }
  0xbd   : > { %592 = vst [vmem:[#allocation2 + $0xb0] sm:$0xf0] %v588_v56  ;;  %593 = vst [vmem:[#allocation2 + $0xb8] sm:$0xf0] %v589_v57  ;;  %1664 = vmatprep.subr.msk.bf16.mxu0 %vm1662_vm8, %v1663_v60  ;;  %1667 = vmatprep.subr.msk.bf16.mxu1 %vm1662_vm8, %v1663_v60 }
  0xbe   : > { %1670 = vmatpush1.bf16.msk.msra.mxu0 %vm1668_vm9, %v1669_v61  ;;  %1673 = vmatpush1.bf16.msk.msra.mxu1 %vm1668_vm9, %v1669_v61  ;;  %vm2153_vm8 = vmand %vm371_vm5, %vm1943_vm4 }
  0xbf   : > { %v552_v62 = vpop.permute.xlu0 %551  ;;  %vm1704_vm9 = vmpackc.low %vm1774_vm10, %vm2023_vm12 }
  0xc0   : > { %v557_v63 = vsel %vm555_vm7, %v546_v58, %v552_v62  ;;  %v560_v0 = vsel %vm555_vm7, %v552_v62, %v546_v58  ;;  %v554_v5 = vpop.permute.xlu1 %553 }
  0xc1   : > { %v558_v6 = vsel %vm555_vm7, %v548_v59, %v554_v5  ;;  %v561_v7 = vsel %vm555_vm7, %v554_v5, %v548_v59  ;;  %vm1692_vm7 = vmpackc.low %vm2023_vm12, %vm1774_vm10 }
  0xc2   : > { %v570_v8 = vsel %vm1931_vm1, %v561_v7, 0.0  ;;  %v571_v14 = vsel %vm1943_vm4, %v558_v6, 0.0  ;;  %vm1698_vm4 = vmpackc.low %vm1774_vm10, %vm2030_vm14 }
  0xc3   : > { %576 = vst [vmem:[#allocation2 + $0xb0] sm:$0xf] %v570_v8  ;;  %577 = vst [vmem:[#allocation2 + $0xb8] sm:$0xf] %v571_v14  ;;  %v605_v19 = vpop.permute.xlu0 %604 }
  0xc4   : > { %v611_v12 = vpop.permute.xlu1 %610 }
  0xc5   : > { %v617_v20 = vsel %vm616_vm11, %v605_v19, %v611_v12  ;;  %v620_v21 = vsel %vm616_vm11, %v611_v12, %v605_v19 }
  0xc6   : > { %v1687_v44 = vpack.c.bf16 %v620_v21, %v865_v35  ;;  %v1693_v46 = vpack.c.bf16 %v617_v20, %v864_v42 }
  0xc7   : > { %v640_v22 = vpop.permute.xlu0 %639 }
  0xc8   : > { %v642_v13 = vpop.permute.xlu1 %641 }
  0xc9   : > { %v643_v23 = vsel %vm616_vm11, %v640_v22, %v642_v13  ;;  %v644_v24 = vsel %vm616_vm11, %v642_v13, %v640_v22 }
  0xca   : > { %v645_v25 = vsel %vm2023_vm12, %v643_v23, 0.0  ;;  %v646_v26 = vsel %vm2030_vm14, %v644_v24, 0.0  ;;  %v859_v27 = vld [vmem:[#allocation2 + $0xb8] sm:$0xff]  ;;  %v858_v28 = vld [vmem:[#allocation2 + $0xb0] sm:$0xff] }
  0xcb   : > { %v649_v30 = vrot.slane %v645_v25, 4  ;;  %v650_v31 = vrot.slane %v646_v26, 4  ;;  %v607_v32 = vpop.permute.xlu0 %606  ;;  %v1675_v34 = vpack.c.bf16 %v859_v27, %v557_v63  ;;  %v1681_v36 = vpack.c.bf16 %v858_v28, %v560_v0 }
  0xcc   : > { %v609_v33 = vpop.permute.xlu1 %608 }
  0xcd   : > { %653 = vst [vmem:[#allocation2 + $0x110] sm:$0xf0] %v649_v30  ;;  %654 = vst [vmem:[#allocation2 + $0x118] sm:$0xf0] %v650_v31  ;;  %1676 = vmatprep.subr.msk.bf16.mxu0 %vm1674_vm13, %v1675_v34  ;;  %1679 = vmatprep.subr.msk.bf16.mxu1 %vm1674_vm13, %v1675_v34  ;;  %vm720_vm13 = vcmp.lt.s32.totalorder %v1917_v10, 112 }
  0xce   : > { %1682 = vmatpush1.bf16.msk.msra.mxu0 %vm1680_vm15, %v1681_v36  ;;  %1685 = vmatpush1.bf16.msk.msra.mxu1 %vm1680_vm15, %v1681_v36  ;;  %vm1716_vm15 = vmpackc.low %vm1931_vm1, %vm1931_vm1 }
  0xcf   : > { %v613_v3 = vpop.permute.xlu0 %612  ;;  %1483 = vmatprep.subr.bf16.mxu0 %v1482_v29  ;;  %1524 = vmatprep.subr.bf16.mxu1 %v1482_v29 }
  0xd0   : > { %v618_v37 = vsel %vm616_vm11, %v607_v32, %v613_v3  ;;  %v621_v38 = vsel %vm616_vm11, %v613_v3, %v607_v32  ;;  %v615_v39 = vpop.permute.xlu1 %614 }
  0xd1   : > { %v619_v40 = vsel %vm616_vm11, %v609_v33, %v615_v39  ;;  %v622_v41 = vsel %vm616_vm11, %v615_v39, %v609_v33  ;;  %vm1710_vm11 = vmpackc.low %vm2153_vm8, %vm2153_vm8 }
  0xd2   : > { %v631_v2 = vsel %vm2023_vm12, %v619_v40, 0.0  ;;  %v632_v4 = vsel %vm2030_vm14, %v622_v41, 0.0  ;;  %1485 = vmatpush1.bf16.msra.mxu0 %v1484_v1  ;;  %1538 = vmatpush1.bf16.msra.mxu1 %v1484_v1 }
  0xd3   : > { %637 = vst [vmem:[#allocation2 + $0x110] sm:$0xf] %v631_v2  ;;  %638 = vst [vmem:[#allocation2 + $0x118] sm:$0xf] %v632_v4  ;;  %v658_v43 = vpop.permute.xlu0 %657  ;;  %1688 = vmatprep.subr.msk.bf16.mxu0 %vm1686_vm2, %v1687_v44  ;;  %1691 = vmatprep.subr.msk.bf16.mxu1 %vm1686_vm2, %v1687_v44  ;;  %vm773_vm2 = vcmp.lt.s32.totalorder %v1917_v10, 111  ;;  %v1775_v10 = vmov 1.0  }
  0xd4   : > { %v660_v45 = vpop.permute.xlu1 %659 }
  0xd6   : > { %1694 = vmatpush1.bf16.msk.msra.mxu0 %vm1692_vm7, %v1693_v46  ;;  %1697 = vmatpush1.bf16.msk.msra.mxu1 %vm1692_vm7, %v1693_v46 }
  0xd7   : > { %v664_v48 = vpop.permute.xlu0 %663 }
  0xd8   : > { %v670_v49 = vsel %vm669_vm0, %v658_v43, %v664_v48  ;;  %v673_v50 = vsel %vm669_vm0, %v664_v48, %v658_v43  ;;  %v666_v51 = vpop.permute.xlu1 %665 }
  0xd9   : > { %v671_v52 = vsel %vm669_vm0, %v660_v45, %v666_v51  ;;  %v674_v18 = vsel %vm669_vm0, %v666_v51, %v660_v45 }
  0xda   : > { %v871_v53 = vld [vmem:[#allocation2 + $0x118] sm:$0xff]  ;;  %v870_v54 = vld [vmem:[#allocation2 + $0x110] sm:$0xff]  ;;  %v1711_v6 = vpack.c.bf16 %v674_v18, %v673_v50  ;;  %v1717_v20 = vpack.c.bf16 %v671_v52, %v670_v49 }
  0xdb   : > { %v693_v55 = vpop.permute.xlu0 %692  ;;  %v1699_v59 = vpack.c.bf16 %v871_v53, %v621_v38  ;;  %v1705_v62 = vpack.c.bf16 %v870_v54, %v618_v37 }
  0xdc   : > { %v695_v56 = vpop.permute.xlu1 %694 }
  0xdd   : > { %v696_v57 = vsel %vm669_vm0, %v693_v55, %v695_v56  ;;  %v697_v58 = vsel %vm669_vm0, %v695_v56, %v693_v55  ;;  %1700 = vmatprep.subr.msk.bf16.mxu0 %vm1698_vm4, %v1699_v59  ;;  %1703 = vmatprep.subr.msk.bf16.mxu1 %vm1698_vm4, %v1699_v59 }
  0xde   : > { %v698_v60 = vsel %vm1931_vm1, %v696_v57, 0.0  ;;  %v699_v61 = vsel %vm2153_vm8, %v697_v58, 0.0  ;;  %1706 = vmatpush1.bf16.msk.msra.mxu0 %vm1704_vm9, %v1705_v62  ;;  %1709 = vmatpush1.bf16.msk.msra.mxu1 %vm1704_vm9, %v1705_v62 }
  0xdf   : > { %v702_v63 = vrot.slane %v698_v60, 4  ;;  %v703_v0 = vrot.slane %v699_v61, 4  ;;  %v662_v5 = vpop.permute.xlu0 %661  ;;  %1712 = vmatprep.subr.msk.bf16.mxu0 %vm1710_vm11, %v1711_v6  ;;  %1715 = vmatprep.subr.msk.bf16.mxu1 %vm1710_vm11, %v1711_v6 }
  0xe0   : > { %v668_v7 = vpop.permute.xlu1 %667 }
  0xe1   : > { %706 = vst [vmem:[#allocation2 + $0x140] sm:$0xf0] %v702_v63  ;;  %707 = vst [vmem:[#allocation2 + $0x148] sm:$0xf0] %v703_v0  ;;  %v672_v8 = vsel %vm669_vm0, %v662_v5, %v668_v7  ;;  %v675_v14 = vsel %vm669_vm0, %v668_v7, %v662_v5 }
  0xe2   : > { %v684_v19 = vsel %vm1931_vm1, %v672_v8, 0.0  ;;  %v685_v12 = vsel %vm2153_vm8, %v675_v14, 0.0  ;;  %1718 = vmatpush1.bf16.msk.msra.mxu0 %vm1716_vm15, %v1717_v20  ;;  %1721 = vmatpush1.bf16.msk.msra.mxu1 %vm1716_vm15, %v1717_v20  ;;  %vm1722_vm1 = vmpackc.low %vm371_vm5, %vm1774_vm10  ;;  %v826_v14 = vld [vmem:[%s2392_s3 + $0x70] sm:$0xff]  ;;  %v828_v20 = vld [vmem:[%s2392_s3 + $0x80] sm:$0xff] }
  0xe3   : > { %690 = vst [vmem:[#allocation2 + $0x140] sm:$0xf] %v684_v19  ;;  %691 = vst [vmem:[#allocation2 + $0x148] sm:$0xf] %v685_v12  ;;  %v709_v21 = vpop.permute.xlu0 %708  ;;  %v829_v19 = vld [vmem:[%s2392_s3 + $0x88] sm:$0xff]  ;;  %v814_v12 = vld [vmem:[%s2392_s3 + $0x10] sm:$0xff] }
  0xe4   : > { %v715_v22 = vpop.permute.xlu1 %714  ;;  %vm2222_vm0 = vmand %vm371_vm5, %vm2030_vm14 }
  0xe5   : > { %v721_v13 = vsel %vm720_vm13, %v709_v21, %v715_v22  ;;  %v724_v23 = vsel %vm720_vm13, %v715_v22, %v709_v21  ;;  %vm1728_vm14 = vmpackc.low %vm1774_vm10, %vm371_vm5  ;;  %v817_v21 = vld [vmem:[%s2392_s3 + $0x28] sm:$0xff]  ;;  %v831_v22 = vld [vmem:[%s2392_s3 + $0x98] sm:$0xff] }
  0xe6   : > { %vm1734_vm7 = vmpackc.low %vm2222_vm0, %vm2222_vm0 }
  0xe7   : > { %v744_v24 = vpop.permute.xlu0 %743  ;;  %vm1746_vm8 = vmpackc.low %vm378_vm3, %vm1774_vm10  ;;  %vm1197_vm3 = vcmask 1043456  }
  0xe8   : > { %v746_v25 = vpop.permute.xlu1 %745 }
  0xe9   : > { %v747_v15 = vsel %vm720_vm13, %v744_v24, %v746_v25  ;;  %v748_v26 = vsel %vm720_vm13, %v746_v25, %v744_v24  ;;  %v819_v24 = vld [vmem:[%s2392_s3 + $0x38] sm:$0xff]  ;;  %v833_v25 = vld [vmem:[%s2392_s3 + $0xa8] sm:$0xff] }
  0xea   : > { %v750_v27 = vsel %vm371_vm5, %v748_v26, 0.0  ;;  %v753_v28 = vrot.slane %v747_v15, 4  ;;  %v877_v29 = vld [vmem:[#allocation2 + $0x148] sm:$0xff]  ;;  %v876_v30 = vld [vmem:[#allocation2 + $0x140] sm:$0xff]  ;;  %v818_v15 = vld [vmem:[%s2392_s3 + $0x30] sm:$0xff] }
  0xeb   : > { %v754_v31 = vrot.slane %v750_v27, 4  ;;  %v711_v32 = vpop.permute.xlu0 %710  ;;  %v1500_v33 = vpack.c.bf16 %v721_v13, %v876_v30  ;;  %v1723_v35 = vpack.c.bf16 %v724_v23, %v877_v29  ;;  %v816_v13 = vld [vmem:[%s2392_s3 + $0x20] sm:$0xff]  ;;  %v830_v23 = vld [vmem:[%s2392_s3 + $0x90] sm:$0xff]  ;;  %v821_v27 = vld [vmem:[%s2392_s3 + $0x48] sm:$0xff] }
  0xec   : > { %757 = vst [vmem:[#allocation2 + $0x170] sm:$0xf0] %v753_v28  ;;  %v713_v34 = vpop.permute.xlu1 %712  ;;  %v832_v26 = vld [vmem:[%s2392_s3 + $0xa0] sm:$0xff]  ;;  %v835_v28 = vld [vmem:[%s2392_s3 + $0xb8] sm:$0xff]  ;;  %v834_v30 = vld [vmem:[%s2392_s3 + $0xb0] sm:$0xff] }
  0xed   : > { %758 = vst [vmem:[#allocation2 + $0x178] sm:$0xf0] %v754_v31  ;;  %1724 = vmatprep.subr.msk.bf16.mxu0 %vm1722_vm1, %v1723_v35  ;;  %1727 = vmatprep.subr.msk.bf16.mxu1 %vm1722_vm1, %v1723_v35  ;;  %v820_v29 = vld [vmem:[%s2392_s3 + $0x40] sm:$0xff]  ;;  %v823_v31 = vld [vmem:[%s2392_s3 + $0x58] sm:$0xff] }
  0xee   : > { %1501 = vmatpush1.bf16.msra.mxu0 %v1500_v33  ;;  %1542 = vmatpush1.bf16.msra.mxu1 %v1500_v33  ;;  %v1776_v33 = vmov 0.0   ;;  %v824_v35 = vld [vmem:[%s2392_s3 + $0x60] sm:$0xff] }
  0xef   : > { %v717_v36 = vpop.permute.xlu0 %716 }
  0xf0   : > { %v722_v1 = vsel %vm720_vm13, %v711_v32, %v717_v36  ;;  %v725_v3 = vsel %vm720_vm13, %v717_v36, %v711_v32  ;;  %v719_v37 = vpop.permute.xlu1 %718  ;;  %v822_v32 = vld [vmem:[%s2392_s3 + $0x50] sm:$0xff] }
  0xf1   : > { %v723_v38 = vsel %vm720_vm13, %v713_v34, %v719_v37  ;;  %v726_v39 = vsel %vm720_vm13, %v719_v37, %v713_v34  ;;  %v825_v34 = vld [vmem:[%s2392_s3 + $0x68] sm:$0xff] }
  0xf2   : > { %v736_v40 = vsel %vm371_vm5, %v726_v39, 0.0  ;;  %741 = vst [vmem:[#allocation2 + $0x170] sm:$0xf] %v723_v38  ;;  %vm1740_vm5 = vmpackc.low %vm2023_vm12, %vm2023_vm12 }
  0xf3   : > { %742 = vst [vmem:[#allocation2 + $0x178] sm:$0xf] %v736_v40  ;;  %v762_v41 = vpop.permute.xlu0 %761 }
  0xf4   : > { %v764_v42 = vpop.permute.xlu1 %763 }
  0xf7   : > { %v768_v4 = vpop.permute.xlu0 %767 }
  0xf8   : > { %v774_v43 = vsel %vm773_vm2, %v762_v41, %v768_v4  ;;  %v777_v44 = vsel %vm773_vm2, %v768_v4, %v762_v41  ;;  %v770_v45 = vpop.permute.xlu1 %769 }
  0xf9   : > { %v775_v46 = vsel %vm773_vm2, %v764_v42, %v770_v45  ;;  %v778_v17 = vsel %vm773_vm2, %v770_v45, %v764_v42  ;;  %v882_v47 = vld [vmem:[#allocation2 + $0x170] sm:$0xff] }
  0xfa   : > { %v883_v48 = vld [vmem:[#allocation2 + $0x178] sm:$0xff]  ;;  %v1504_v51 = vpack.c.bf16 %v882_v47, %v722_v1  ;;  %v1735_v11 = vpack.c.bf16 %v778_v17, %v777_v44  ;;  %v1741_v0 = vpack.c.bf16 %v775_v46, %v774_v43 }
  0xfb   : > { %v797_v49 = vpop.permute.xlu0 %796  ;;  %v1729_v53 = vpack.c.bf16 %v883_v48, %v725_v3 }
  0xfc   : > { %v799_v50 = vpop.permute.xlu1 %798 }
  0xfd   : > { %v800_v52 = vsel %vm773_vm2, %v797_v49, %v799_v50  ;;  %v801_v18 = vsel %vm773_vm2, %v799_v50, %v797_v49  ;;  %1730 = vmatprep.subr.msk.bf16.mxu0 %vm1728_vm14, %v1729_v53  ;;  %1733 = vmatprep.subr.msk.bf16.mxu1 %vm1728_vm14, %v1729_v53 }
  0xfe   : > { %v802_v54 = vsel %vm2023_vm12, %v800_v52, 0.0  ;;  %v803_v55 = vsel %vm2222_vm0, %v801_v18, 0.0  ;;  %1505 = vmatpush1.bf16.msra.mxu0 %v1504_v51  ;;  %1543 = vmatpush1.bf16.msra.mxu1 %v1504_v51 }
  0xff   : > { %v806_v56 = vrot.slane %v802_v54, 4  ;;  %v807_v57 = vrot.slane %v803_v55, 4  ;;  %v766_v58 = vpop.permute.xlu0 %765  ;;  %1736 = vmatprep.subr.msk.bf16.mxu0 %vm1734_vm7, %v1735_v11  ;;  %1739 = vmatprep.subr.msk.bf16.mxu1 %vm1734_vm7, %v1735_v11 }
 0x100   : > { %v772_v59 = vpop.permute.xlu1 %771 }
 0x101   : > { %810 = vst [vmem:[#allocation2 + $0x1a0] sm:$0xf0] %v806_v56  ;;  %811 = vst [vmem:[#allocation2 + $0x1a8] sm:$0xf0] %v807_v57  ;;  %v776_v60 = vsel %vm773_vm2, %v766_v58, %v772_v59  ;;  %v779_v61 = vsel %vm773_vm2, %v772_v59, %v766_v58 }
 0x102   : > { %v788_v62 = vsel %vm2023_vm12, %v776_v60, 0.0  ;;  %v789_v63 = vsel %vm2222_vm0, %v779_v61, 0.0  ;;  %1742 = vmatpush1.bf16.msk.msra.mxu0 %vm1740_vm5, %v1741_v0  ;;  %1745 = vmatpush1.bf16.msk.msra.mxu1 %vm1740_vm5, %v1741_v0 }
 0x103   : > { %794 = vst [vmem:[#allocation2 + $0x1a0] sm:$0xf] %v788_v62  ;;  %795 = vst [vmem:[#allocation2 + $0x1a8] sm:$0xf] %v789_v63 }
 0x10a   : > { %v889_v5 = vld [vmem:[#allocation2 + $0x1a8] sm:$0xff]  ;;  %v888_v6 = vld [vmem:[#allocation2 + $0x1a0] sm:$0xff] }
 0x10b   : > { %v1747_v7 = vpack.c.bf16 %v1775_v10, %v889_v5  ;;  %v1753_v8 = vpack.c.bf16 %v1775_v10, %v888_v6 }
 0x10d   : > { %1748 = vmatprep.subr.msk.bf16.mxu0 %vm1746_vm8, %v1747_v7  ;;  %1751 = vmatprep.subr.msk.bf16.mxu1 %vm1746_vm8, %v1747_v7 }
 0x10e   : > { %1754 = vmatpush1.bf16.msk.msra.mxu0 %vm1746_vm8, %v1753_v8  ;;  %1757 = vmatpush1.bf16.msk.msra.mxu1 %vm1746_vm8, %v1753_v8 }
 0x111   : > { %994 = vmatmul.mubr.f32.vlgmr.msra.gmra.mrb[0].mxu0 %v812_v9  ;;  %1036 = vmatmul.mubr.f32.vlgmr.msra.gmra.mrb[0].mxu1 %v826_v14 }
 0x112   : > { %1440 = vmatprep.mubr.msk.f32.mxu0 %vm892_vm6, %v815_v16  ;;  %1447 = vmatprep.mubr.msk.f32.mxu1 %vm892_vm6, %v829_v19 }
 0x115   : > { %1000 = vmatmul.mubr.f32.gmra.mrb[2].mxu0 %v814_v12  ;;  %1042 = vmatmul.mubr.f32.gmra.mrb[2].mxu1 %v828_v20 }
 0x116   : > { %1441 = vmatprep.mubr.msk.f32.mxu0 %vm892_vm6, %v817_v21  ;;  %1448 = vmatprep.mubr.msk.f32.mxu1 %vm892_vm6, %v831_v22 }
 0x119   : > { %1006 = vmatmul.mubr.f32.gmra.mrb[4].mxu0 %v816_v13  ;;  %1048 = vmatmul.mubr.f32.gmra.mrb[4].mxu1 %v830_v23 }
 0x11a   : > { %1442 = vmatprep.mubr.msk.f32.mxu0 %vm892_vm6, %v819_v24  ;;  %1449 = vmatprep.mubr.msk.f32.mxu1 %vm892_vm6, %v833_v25 }
 0x11d   : > { %1012 = vmatmul.mubr.f32.gmra.mrb[6].mxu0 %v818_v15  ;;  %1054 = vmatmul.mubr.f32.gmra.mrb[6].mxu1 %v832_v26 }
 0x11e   : > { %1443 = vmatprep.mubr.msk.f32.mxu0 %vm892_vm6, %v821_v27  ;;  %1450 = vmatprep.mubr.msk.f32.mxu1 %vm892_vm6, %v835_v28 }
 0x121   : > { %1018 = vmatmul.mubr.f32.gmra.mrb[8].mxu0 %v820_v29  ;;  %1060 = vmatmul.mubr.f32.gmra.mrb[8].mxu1 %v834_v30 }
 0x122   : > { %1444 = vmatprep.mubr.msk.f32.mxu0 %vm892_vm6, %v823_v31  ;;  %1268 = vmatprep.mubr.f32.mxu1 %v1776_v33 }
 0x125   : > { %1024 = vmatmul.mubr.f32.gmra.mrb[10].mxu0 %v822_v32 }
 0x126   : > { %1445 = vmatprep.mubr.msk.f32.mxu0 %vm892_vm6, %v825_v34  ;;  %vm1193_vm6 = vcmask 162816  }
 0x129   : > { %1030 = vmatmul.mubr.f32.gmra.mrb[12].mxu0 %v824_v35 }
 0x1e4   : > { %v995_v36 = vpop.f32.mrb[0].mxu0  ;;  %v2338_v1 = vpop.f32.mrb[0].mxu1 }
 0x1e5   : > { %v1066_v3 = vmul.f32 0.5, %v995_v36  ;;  %v997_v37 = vpop.f32.mrb[1].mxu0  ;;  %v2340_v38 = vpop.f32.mrb[1].mxu1  ;;  %v1116_v29 = vmul.f32 0.5, %v2338_v1  ;;  %v1144_v36 = vld [vmem:[%s2350_s12] sm:$0xff] }
 0x1e6   : > { %v1067_v39 = vmul.f32 0.5, %v997_v37  ;;  %v1117_v30 = vmul.f32 0.5, %v2340_v38  ;;  %v1145_v38 = vld [vmem:[%s2350_s12 + $0x8] sm:$0xff] }
 0x1e7   : > { %1566 = vtanh.f32 %v1066_v3 }
 0x1e8   : > { %v1001_v40 = vpop.f32.mrb[2].mxu0  ;;  %v2342_v41 = vpop.f32.mrb[2].mxu1  ;;  %1568 = vtanh.f32 %v1067_v39 }
 0x1e9   : > { %v1068_v42 = vmul.f32 0.5, %v1001_v40  ;;  %v1003_v2 = vpop.f32.mrb[3].mxu0  ;;  %v2344_v4 = vpop.f32.mrb[3].mxu1  ;;  %v1118_v1 = vmul.f32 0.5, %v2342_v41  ;;  %v1146_v41 = vld [vmem:[%s2350_s12 + $0x10] sm:$0xff] }
 0x1ea   : > { %v1069_v43 = vmul.f32 0.5, %v1003_v2 }
 0x1eb   : > { %1570 = vtanh.f32 %v1068_v42 }
 0x1ec   : > { %v1007_v44 = vpop.f32.mrb[4].mxu0  ;;  %v1049_v45 = vpop.f32.mrb[4].mxu1  ;;  %1572 = vtanh.f32 %v1069_v43 }
 0x1ed   : > { %v1070_v46 = vmul.f32 0.5, %v1007_v44  ;;  %v1009_v17 = vpop.f32.mrb[5].mxu0  ;;  %v1051_v47 = vpop.f32.mrb[5].mxu1 }
 0x1ee   : > { %v1071_v48 = vmul.f32 0.5, %v1009_v17 }
 0x1ef   : > { %1574 = vtanh.f32 %v1070_v46 }
 0x1f0   : > { %1576 = vtanh.f32 %v1049_v45  ;;  %v1013_v49 = vpop.f32.mrb[6].mxu0  ;;  %v1055_v50 = vpop.f32.mrb[6].mxu1 }
 0x1f1   : > { %1578 = vtanh.f32 %v1071_v48  ;;  %v1090_v51 = vmul.f32 0.5, %v1013_v49  ;;  %v1015_v52 = vpop.f32.mrb[7].mxu0  ;;  %v1057_v18 = vpop.f32.mrb[7].mxu1  ;;  %v1119_v48 = vmul.f32 0.5, %v2344_v4 }
 0x1f2   : > { %v1567_v53 = vpop.eup %1566  ;;  %1580 = vtanh.f32 %v1051_v47  ;;  %v1091_v54 = vmul.f32 0.5, %v1015_v52 }
 0x1f3   : > { %1582 = vtanh.f32 %v1090_v51  ;;  %v1569_v55 = vpop.eup %1568  ;;  %v1078_v58 = vmul.f32 0.5, %v1567_v53 }
 0x1f4   : > { %1584 = vtanh.f32 %v1055_v50  ;;  %v1019_v56 = vpop.f32.mrb[8].mxu0  ;;  %v1061_v57 = vpop.f32.mrb[8].mxu1  ;;  %v1079_v63 = vmul.f32 0.5, %v1569_v55 }
 0x1f5   : > { %1586 = vtanh.f32 %v1091_v54  ;;  %v1092_v11 = vmul.f32 0.5, %v1019_v56  ;;  %v1021_v59 = vpop.f32.mrb[9].mxu0  ;;  %v1063_v60 = vpop.f32.mrb[9].mxu1  ;;  %v1084_v10 = vadd.f32 0.5, %v1078_v58  ;;  %v1147_v56 = vld [vmem:[%s2350_s12 + $0x18] sm:$0xff] }
 0x1f6   : > { %v1571_v61 = vpop.eup %1570  ;;  %1588 = vtanh.f32 %v1057_v18  ;;  %v1093_v62 = vmul.f32 0.5, %v1021_v59  ;;  %v1085_v12 = vadd.f32 0.5, %v1079_v63 }
 0x1f7   : > { %1590 = vtanh.f32 %v1092_v11  ;;  %v1573_v0 = vpop.eup %1572  ;;  %v1080_v7 = vmul.f32 0.5, %v1571_v61 }
 0x1f8   : > { %1592 = vtanh.f32 %v1061_v57  ;;  %v1025_v5 = vpop.f32.mrb[10].mxu0  ;;  %v1081_v20 = vmul.f32 0.5, %v1573_v0  ;;  %v1148_v0 = vld [vmem:[%s2350_s12 + $0x20] sm:$0xf] }
 0x1f9   : > { %v1575_v6 = vpop.eup %1574  ;;  %1594 = vtanh.f32 %v1093_v62  ;;  %v1094_v8 = vmul.f32 0.5, %v1025_v5  ;;  %v1027_v9 = vpop.f32.mrb[11].mxu0  ;;  %v1086_v24 = vadd.f32 0.5, %v1080_v7  ;;  %v1149_v5 = vld [vmem:[%s2350_s12 + $0x28] sm:$0xf] }
 0x1fa   : > { %v1577_v14 = vpop.eup %1576  ;;  %1596 = vtanh.f32 %v1063_v60  ;;  %v1095_v16 = vmul.f32 0.5, %v1027_v9  ;;  %v1082_v25 = vmul.f32 0.5, %v1575_v6  ;;  %v1087_v34 = vadd.f32 0.5, %v1081_v20 }
 0x1fb   : > { %v1579_v19 = vpop.eup %1578  ;;  %v1156_v21 = vmul.f32 %v1577_v14, %v1084_v10  ;;  %1598 = vtanh.f32 %v1094_v8 }
 0x1fc   : > { %v1581_v22 = vpop.eup %1580  ;;  %1600 = vtanh.f32 %v1095_v16  ;;  %v1031_v13 = vpop.f32.mrb[12].mxu0  ;;  %v1083_v35 = vmul.f32 0.5, %v1579_v19  ;;  %v1088_v2 = vadd.f32 0.5, %v1082_v25 }
 0x1fd   : > { %v1583_v23 = vpop.eup %1582  ;;  %v1157_v15 = vmul.f32 %v1581_v22, %v1085_v12  ;;  %v1114_v26 = vmul.f32 0.5, %v1031_v13  ;;  %v1033_v27 = vpop.f32.mrb[13].mxu0 }
 0x1fe   : > { %v1585_v28 = vpop.eup %1584  ;;  %v1102_v31 = vmul.f32 0.5, %v1583_v23  ;;  %v1115_v32 = vmul.f32 0.5, %v1033_v27  ;;  %v1089_v49 = vadd.f32 0.5, %v1083_v35 }
 0x1ff   : > { %v1587_v33 = vpop.eup %1586  ;;  %v1158_v3 = vmul.f32 %v1585_v28, %v1086_v24  ;;  %1602 = vtanh.f32 %v1114_v26 }
 0x200   : > { %v1589_v37 = vpop.eup %1588  ;;  %v1108_v39 = vadd.f32 0.5, %v1102_v31  ;;  %v1103_v40 = vmul.f32 0.5, %v1587_v33  ;;  %1604 = vtanh.f32 %v1115_v32 }
 0x201   : > { %v1591_v42 = vpop.eup %1590  ;;  %v1159_v43 = vmul.f32 %v1589_v37, %v1087_v34  ;;  %1606 = vtanh.f32 %v1116_v29 }
 0x202   : > { %v1593_v44 = vpop.eup %1592  ;;  %v1150_v45 = vmul.f32 %v1144_v36, %v1108_v39  ;;  %v1109_v46 = vadd.f32 0.5, %v1103_v40  ;;  %v1104_v17 = vmul.f32 0.5, %v1591_v42  ;;  %1608 = vtanh.f32 %v1117_v30 }
 0x203   : > { %v1595_v47 = vpop.eup %1594  ;;  %v1160_v50 = vmul.f32 %v1593_v44, %v1088_v2  ;;  %1610 = vtanh.f32 %v1118_v1 }
 0x204   : > { %v1597_v51 = vpop.eup %1596  ;;  %v1162_v52 = vadd.f32 %v1156_v21, %v1150_v45  ;;  %v1151_v18 = vmul.f32 %v1145_v38, %v1109_v46  ;;  %v1110_v53 = vadd.f32 0.5, %v1104_v17  ;;  %v1105_v54 = vmul.f32 0.5, %v1595_v47  ;;  %v1192_v46 = vld [vmem:[%s2393_s4] sm:$0xf] }
 0x205   : > { %v1599_v55 = vpop.eup %1598  ;;  %v1161_v4 = vmul.f32 %v1597_v51, %v1089_v49 }
 0x206   : > { %v1601_v57 = vpop.eup %1600  ;;  %1612 = vtanh.f32 %v1162_v52  ;;  %1186 = vst [vmem:[%s2362_s15] sm:$0xff] %v1162_v52  ;;  %v1163_v58 = vadd.f32 %v1157_v15, %v1151_v18  ;;  %v1152_v11 = vmul.f32 %v1146_v41, %v1110_v53  ;;  %v1111_v59 = vadd.f32 0.5, %v1105_v54 }
 0x207   : > { %1614 = vtanh.f32 %v1119_v48  ;;  %v1106_v60 = vmul.f32 0.5, %v1599_v55  ;;  %v1107_v61 = vmul.f32 0.5, %v1601_v57 }
 0x208   : > { %1616 = vtanh.f32 %v1163_v58  ;;  %1187 = vst [vmem:[%s2362_s15 + $0x8] sm:$0xff] %v1163_v58  ;;  %v1164_v62 = vadd.f32 %v1158_v3, %v1152_v11  ;;  %v1153_v63 = vmul.f32 %v1147_v56, %v1111_v59 }
 0x209   : > { %v1603_v6 = vpop.eup %1602  ;;  %v1112_v10 = vadd.f32 0.5, %v1106_v60  ;;  %v1113_v7 = vadd.f32 0.5, %v1107_v61 }
 0x20a   : > { %v1605_v8 = vpop.eup %1604  ;;  %1618 = vtanh.f32 %v1164_v62  ;;  %1188 = vst [vmem:[%s2362_s15 + $0x10] sm:$0xff] %v1164_v62  ;;  %v1165_v9 = vadd.f32 %v1159_v43, %v1153_v63  ;;  %v1126_v14 = vmul.f32 0.5, %v1603_v6 }
 0x20b   : > { %v1154_v16 = vmul.f32 %v1148_v0, %v1112_v10  ;;  %v1155_v19 = vmul.f32 %v1149_v5, %v1113_v7  ;;  %v1127_v12 = vmul.f32 0.5, %v1605_v8  ;;  %v1607_v20 = vpop.eup %1606 }
 0x20c   : > { %1620 = vtanh.f32 %v1165_v9  ;;  %1189 = vst [vmem:[%s2362_s15 + $0x18] sm:$0xff] %v1165_v9  ;;  %v1609_v21 = vpop.eup %1608  ;;  %v1132_v23 = vadd.f32 0.5, %v1126_v14  ;;  %v1128_v25 = vmul.f32 0.5, %v1607_v20 }
 0x20d   : > { %v1166_v22 = vadd.f32 %v1160_v50, %v1154_v16  ;;  %v1167_v13 = vadd.f32 %v1161_v4, %v1155_v19  ;;  %v1611_v24 = vpop.eup %1610  ;;  %v1133_v15 = vadd.f32 0.5, %v1127_v12  ;;  %v1129_v28 = vmul.f32 0.5, %v1609_v21 }
 0x20e   : > { %v1134_v31 = vadd.f32 0.5, %v1128_v25  ;;  %v1130_v34 = vmul.f32 0.5, %v1611_v24 }
 0x20f   : > { %1622 = vtanh.f32 %v1166_v22  ;;  %1190 = vst [vmem:[%s2362_s15 + $0x20] sm:$0xf] %v1166_v22  ;;  %1191 = vst [vmem:[%s2362_s15 + $0x28] sm:$0xf] %v1167_v13  ;;  %v1135_v35 = vadd.f32 0.5, %v1129_v28 }
 0x210   : > { %v1613_v26 = vpop.eup %1612  ;;  %1624 = vtanh.f32 %v1167_v13  ;;  %v1136_v42 = vadd.f32 0.5, %v1130_v34 }
 0x211   : > { %v1615_v27 = vpop.eup %1614  ;;  %v1174_v29 = vmul.f32 %v1613_v26, %v1132_v23 }
 0x212   : > { %v1617_v30 = vpop.eup %1616  ;;  %v1131_v36 = vmul.f32 0.5, %v1615_v27 }
 0x213   : > { %1180 = vst [vmem:[%s338_s18] sm:$0xff] %v1174_v29  ;;  %v1175_v32 = vmul.f32 %v1617_v30, %v1133_v15 }
 0x214   : > { %v1619_v33 = vpop.eup %1618  ;;  %v1137_v2 = vadd.f32 0.5, %v1131_v36 }
 0x215   : > { %1181 = vst [vmem:[%s338_s18 + $0x8] sm:$0xff] %v1175_v32  ;;  %v1176_v3 = vmul.f32 %v1619_v33, %v1134_v31 }
 0x216   : > { %v1621_v37 = vpop.eup %1620 }
 0x217   : > { %v1177_v39 = vmul.f32 %v1621_v37, %v1135_v35  ;;  %1182 = vst [vmem:[%s338_s18 + $0x10] sm:$0xff] %v1176_v3  ;;  %v1516_v40 = vpack.c.bf16 %v1176_v3, %v1174_v29 }
 0x219   : > { %v1623_v1 = vpop.eup %1622  ;;  %1183 = vst [vmem:[%s338_s18 + $0x18] sm:$0xff] %v1177_v39  ;;  %v1514_v38 = vpack.c.bf16 %v1177_v39, %v1175_v32 }
 0x21a   : > { %v1625_v43 = vpop.eup %1624  ;;  %v1178_v44 = vmul.f32 %v1623_v1, %v1136_v42 }
 0x21b   : > { %1515 = vmatprep.subr.bf16.mxu1 %v1514_v38  ;;  %v1179_v45 = vmul.f32 %v1625_v43, %v1137_v2 }
 0x21c   : > { %1517 = vmatpush1.bf16.msra.mxu1 %v1516_v40  ;;  %1184 = vst [vmem:[%s338_s18 + $0x20] sm:$0xf] %v1178_v44 }
 0x21d   : > { %1185 = vst [vmem:[%s338_s18 + $0x28] sm:$0xf] %v1179_v45  ;;  %1451 = vmatprep.subr.msk.mxu1 %vm1197_vm3, %v1179_v45 }
 0x220   : > { %1452 = vmatpush1.msk.msra.mxu1 %vm1197_vm3, %v1178_v44 }
 0x221   : > { %1453 = vmatmul.mubr.msk.f32.vlgmr.msra.gmra.mrb[10].mxu1 %vm1193_vm6, %v1192_v46 }
 0x2f4   : > { %v1270_v17 = vpop.f32.mrb[10].mxu1 }
 0x2f5   : > { %v1272_v47 = vpop.f32.mrb[11].mxu1 }
 0x2f6   : > { %v1277_v48 = vcombine.low %v1270_v17, %v1272_v47 }
 0x2f8   : > { %1279 = vst [vmem:[%s333_s22] sm:$0xff] %v1277_v48 }
 0x2f9 PF: > { %s18_s24 = sadd.s32 1, %s1764_s24  }
 0x2fa   : > { %p15_p4 = scmp.ge.s32.totalorder %s18_s24, 4  }
 0x2fc   :  { %17 = sbr.rel (!%p15_p4) target bundleno = 1 (0x1), region = 100 }

</bundles_post_ra>
